<compile_context>
chip_gen: v5e
topology: v5e:2x2
jax: 0.10.0
libtpu: 0.0.40
codegen_flags: <defaults>
</compile_context>

<pallas_src>
import functools

import jax
import jax.numpy as jnp
from jax import lax
from jax.experimental import pallas as pl
from jax.experimental.pallas import tpu as pltpu


# ---------------------------------------------------------------------------
# Kernel
# ---------------------------------------------------------------------------
def _fused_kernel(x_ref, t_ref, out_ref, xpad, y1pad,
                  *, B, H, WC, KH, dh, ph1, ph2):
    """relu -> conv1 -> relu -> conv2 -> + x for a block of B images.

    x_ref  : (B, H, WC) f32        lane-dense activations, row = (h, w*C)
    t_ref  : (2, KH*WC, WC) bf16   block-Toeplitz weight slabs
                                   [0] = conv1, [1] = conv2; vertical taps are
                                   concatenated along the contraction dim.
    out_ref: (B, H, WC) f32
    xpad   : VMEM (B, H + 2*ph1, WC) f32   vertically padded relu(x)
    y1pad  : VMEM (B, H + 2*ph2, WC) f32   vertically padded relu(conv1(.))
    """
    x = x_ref[...]                                          # (B, H, WC) f32

    # ---- conv1(relu(x)) ---------------------------------------------------
    # Zero only the vertical "same"-padding border rows; the interior is
    # fully overwritten every iteration.  (Not gated on program_id: each
    # TensorCore has its own scratch under megacore "parallel".)
    if ph1 > 0:
        xpad[:, 0:ph1, :] = jnp.zeros((B, ph1, WC), jnp.float32)
        xpad[:, ph1 + H:2 * ph1 + H, :] = jnp.zeros((B, ph1, WC), jnp.float32)
    xpad[:, ph1:ph1 + H, :] = jnp.maximum(x, 0.0)

    # One MXU matmul: (B*H, KH*WC) @ (KH*WC, WC), bf16 operands, f32 acc.
    lhs1 = jnp.concatenate(
        [xpad[:, kh:kh + H, :].reshape(B * H, WC).astype(jnp.bfloat16)
         for kh in range(KH)], axis=1)
    y1 = jnp.dot(lhs1, t_ref[0], preferred_element_type=jnp.float32)

    # ---- conv2(relu(y1)) with vertical dilation dh, then residual add ------
    if ph2 > 0:
        y1pad[:, 0:ph2, :] = jnp.zeros((B, ph2, WC), jnp.float32)
        y1pad[:, ph2 + H:2 * ph2 + H, :] = jnp.zeros((B, ph2, WC), jnp.float32)
    y1pad[:, ph2:ph2 + H, :] = jnp.maximum(y1, 0.0).reshape(B, H, WC)

    lhs2 = jnp.concatenate(
        [y1pad[:, kh * dh:kh * dh + H, :].reshape(B * H, WC).astype(jnp.bfloat16)
         for kh in range(KH)], axis=1)
    y2 = jnp.dot(lhs2, t_ref[1], preferred_element_type=jnp.float32)

    out_ref[...] = (y2.reshape(B, H, WC) + x).astype(out_ref.dtype)


# ---------------------------------------------------------------------------
# Init-time weight preprocessing (hoisted out of the per-forward jit)
# ---------------------------------------------------------------------------
def _block_toeplitz_slab(w_hwio, W, dw, pw):
    """(KH*W*C, W*C) slab folding horizontal taps + horizontal 'same' padding
    into the contraction dim; vertical taps concatenated along K.

    slab[kh*W*C + ws*C + i, w*C + o] = w_hwio[kh, kw, i, o] with
    ws = w + kw*dw - pw, and taps that land in the horizontal pad contribute 0.
    """
    KH, KW, C, _ = w_hwio.shape
    slabs = []
    for kh in range(KH):
        t = jnp.zeros((W * C, W * C), jnp.float32)
        for kw in range(KW):
            off = kw * dw - pw
            sel = jnp.eye(W, W, k=-off, dtype=jnp.float32)   # sel[w+off, w] = 1
            t = t + jnp.kron(sel, w_hwio[kh, kw].astype(jnp.float32))
        slabs.append(t)
    return jnp.concatenate(slabs, axis=0)                    # (KH*W*C, W*C)


def precompute_weight_slabs(w1_oihw, w2_oihw, W, dilation):
    """Build both convs' block-Toeplitz slabs ONCE at init; returns a single
    (2, KH*W*C, W*C) bf16 array (one constant-block kernel input)."""
    KW = w1_oihw.shape[3]
    dh, dw = dilation
    pw1 = (KW - 1) // 2
    pw2 = dw * (KW - 1) // 2
    w1 = jnp.transpose(w1_oihw, (2, 3, 1, 0))   # OIHW -> HWIO
    w2 = jnp.transpose(w2_oihw, (2, 3, 1, 0))
    t1 = _block_toeplitz_slab(w1, W, 1, pw1)
    t2 = _block_toeplitz_slab(w2, W, dw, pw2)
    return jnp.stack([t1, t2]).astype(jnp.bfloat16)


# ---------------------------------------------------------------------------
# Forward
# ---------------------------------------------------------------------------
def _pick_block_batch(N, H):
    # Aim for M = B*H ~ 128-256 MXU rows per step, but keep >= 2 grid steps
    # when the batch allows it so both v7x TensorCores get work.
    B = min(N, max(1, 256 // H))
    if B == N and N > 1 and (N // 2) * H >= 128:
        B = -(-N // 2)
    return B


@functools.partial(jax.jit, static_argnames=("dilation",))
def dilation_embedding_block_forward(x_nh_wc, t_slabs, dilation=(2, 2)):
    """Fused forward on lane-dense activations.

    x_nh_wc: (N, H, W*C) float32   (NHWC with the last two dims flattened)
    t_slabs: (2, KH*W*C, W*C) bf16 from precompute_weight_slabs.
    """
    N, H, WC = x_nh_wc.shape
    KH = t_slabs.shape[1] // t_slabs.shape[2]
    dh = dilation[0]
    ph1 = (KH - 1) // 2
    ph2 = dh * (KH - 1) // 2

    B = _pick_block_batch(N, H)
    n_blocks = -(-N // B)
    Npad = n_blocks * B
    x = x_nh_wc.astype(jnp.float32)
    if Npad != N:
        x = jnp.pad(x, ((0, Npad - N), (0, 0), (0, 0)))

    kern = functools.partial(_fused_kernel, B=B, H=H, WC=WC, KH=KH,
                             dh=dh, ph1=ph1, ph2=ph2)

    out = pl.pallas_call(
        kern,
        out_shape=jax.ShapeDtypeStruct((Npad, H, WC), jnp.float32),
        grid_spec=pltpu.PrefetchScalarGridSpec(
            num_scalar_prefetch=0,
            grid=(n_blocks,),
            in_specs=[
                pl.BlockSpec((B, H, WC), lambda n: (n, 0, 0)),
                pl.BlockSpec((2, KH * WC, WC), lambda n: (0, 0, 0)),
            ],
            out_specs=pl.BlockSpec((B, H, WC), lambda n: (n, 0, 0)),
            scratch_shapes=[
                pltpu.VMEM((B, H + 2 * ph1, WC), jnp.float32),
                pltpu.VMEM((B, H + 2 * ph2, WC), jnp.float32),
            ],
        ),
        compiler_params=pltpu.CompilerParams(
            dimension_semantics=("parallel",)),
    )(x, t_slabs)

    return out[:N] if Npad != N else out


def dilation_embedding_block_nchw(x_nchw, t_slabs, dilation=(2, 2)):
    """NCHW convenience wrapper (layout glue for the test harness only).

    TODO(synk): when blocks are stacked, keep activations in (N, H, W*C)
    across blocks so these transposes happen once per network, not per block.
    """
    N, C, H, W = x_nchw.shape
    x = jnp.transpose(x_nchw, (0, 2, 3, 1)).reshape(N, H, W * C)
    out = dilation_embedding_block_forward(x, t_slabs, dilation=dilation)
    return jnp.transpose(out.reshape(N, H, W, C), (0, 3, 1, 2))


# ---------------------------------------------------------------------------
# Pure-JAX reference (mirrors the PyTorch module exactly, f32)
# ---------------------------------------------------------------------------
def _reference_forward(x_nchw, w1_oihw, w2_oihw, dilation):
    KH, KW = w1_oihw.shape[2], w1_oihw.shape[3]
    p1 = ((KH - 1) // 2, (KW - 1) // 2)
    p2 = (dilation[0] * (KH - 1) // 2, dilation[1] * (KW - 1) // 2)
    dn = ("NCHW", "OIHW", "NCHW")
    r = jnp.maximum(x_nchw, 0.0)
    y1 = lax.conv_general_dilated(
        r, w1_oihw, window_strides=(1, 1),
        padding=((p1[0], p1[0]), (p1[1], p1[1])), dimension_numbers=dn)
    r2 = jnp.maximum(y1, 0.0)
    y2 = lax.conv_general_dilated(
        r2, w2_oihw, window_strides=(1, 1),
        padding=((p2[0], p2[0]), (p2[1], p2[1])),
        rhs_dilation=dilation, dimension_numbers=dn)
    return y2 + x_nchw


if __name__ == "__main__":
    N, C, H, W = 16, 8, 16, 16          # W*C = 128 lanes; B*H = 128 MXU rows
    KH, KW = 3, 3
    dilation = (2, 2)

    key = jax.random.PRNGKey(0)
    kx, k1, k2 = jax.random.split(key, 3)

    x = jax.random.normal(kx, (N, C, H, W), dtype=jnp.float32)

    # Deterministic Conv2d-style init (uniform +/- 1/sqrt(fan_in)), OIHW.
    fan_in = C * KH * KW
    bound = 1.0 / jnp.sqrt(jnp.float32(fan_in))
    w1 = jax.random.uniform(k1, (C, C, KH, KW), jnp.float32, -bound, bound)
    w2 = jax.random.uniform(k2, (C, C, KH, KW), jnp.float32, -bound, bound)

    # Init-time weight preprocessing (done once, outside the jitted forward).
    t_slabs = jax.block_until_ready(precompute_weight_slabs(w1, w2, W, dilation))

    out = dilation_embedding_block_nchw(x, t_slabs, dilation=dilation)
    out = jax.block_until_ready(out)

    ref = _reference_forward(x, w1, w2, dilation)
    assert out.shape == (N, C, H, W)
    # bf16 matmul operands (f32 accumulation) trade ~1e-3 abs error for
    # 2-4x MXU throughput; tolerance loosened accordingly (see perf review).
    assert jnp.allclose(out, ref, atol=1e-2, rtol=1e-2), (
        float(jnp.max(jnp.abs(out - ref))))

    print("KERNEL_OK")
</pallas_src>

<mosaic_0001>
module attributes {stable_mosaic.version = 11 : i64} {
  func.func @_fused_kernel(%arg0: i32, %arg1: memref<8x16x128xf32, #tpu.memory_space<vmem>>, %arg2: memref<2x384x128xbf16, #tpu.memory_space<vmem>>, %arg3: memref<8x16x128xf32, #tpu.memory_space<vmem>>, %arg4: memref<8x18x128xf32, #tpu.memory_space<vmem>>, %arg5: memref<8x20x128xf32, #tpu.memory_space<vmem>>) attributes {dimension_semantics = [#tpu.dimension_semantics<parallel>], iteration_bounds = array<i64: 2>, scalar_prefetch = 0 : i64, scratch_operands = 2 : i64, tpu.core_type = #tpu.core_type<tc>, window_params = [{transform_indices = @transform_0, window_bounds = array<i64: 8, 16, 128>}, {pipeline_mode = #tpu.pipeline_mode<synchronous>, transform_indices = @transform_1, window_bounds = array<i64: 2, 384, 128>}, {transform_indices = @transform_2, window_bounds = array<i64: 8, 16, 128>}]} {
    %c0 = arith.constant 0 : index
    %c0_0 = arith.constant 0 : index
    %c0_1 = arith.constant 0 : index
    %0 = vector.load %arg1[%c0, %c0_0, %c0_1] : memref<8x16x128xf32, #tpu.memory_space<vmem>>, vector<8x16x128xf32>
    %cst = arith.constant 0.000000e+00 : f32
    %1 = vector.broadcast %cst : f32 to vector<8x1x128xf32>
    %c0_2 = arith.constant 0 : index
    %c0_3 = arith.constant 0 : index
    %c0_4 = arith.constant 0 : index
    %2 = vector.load %arg4[%c0_2, %c0_3, %c0_4] : memref<8x18x128xf32, #tpu.memory_space<vmem>>, vector<8x1x128xf32>
    tpu.vector_store %arg4[%c0_2, %c0_3, %c0_4], %1 {strides = array<i32>} : memref<8x18x128xf32, #tpu.memory_space<vmem>>, vector<8x1x128xf32>,
    %cst_5 = arith.constant 0.000000e+00 : f32
    %3 = vector.broadcast %cst_5 : f32 to vector<8x1x128xf32>
    %c0_6 = arith.constant 0 : index
    %c17 = arith.constant 17 : index
    %c0_7 = arith.constant 0 : index
    %4 = vector.load %arg4[%c0_6, %c17, %c0_7] : memref<8x18x128xf32, #tpu.memory_space<vmem>>, vector<8x1x128xf32>
    tpu.vector_store %arg4[%c0_6, %c17, %c0_7], %3 {strides = array<i32>} : memref<8x18x128xf32, #tpu.memory_space<vmem>>, vector<8x1x128xf32>,
    %cst_8 = arith.constant 0.000000e+00 : f32
    %5 = vector.broadcast %cst_8 : f32 to vector<8x16x128xf32>
    %6 = arith.maximumf %0, %5 : vector<8x16x128xf32>
    %c0_9 = arith.constant 0 : index
    %c1 = arith.constant 1 : index
    %c0_10 = arith.constant 0 : index
    %7 = vector.load %arg4[%c0_9, %c1, %c0_10] : memref<8x18x128xf32, #tpu.memory_space<vmem>>, vector<8x16x128xf32>
    tpu.vector_store %arg4[%c0_9, %c1, %c0_10], %6 {strides = array<i32>} : memref<8x18x128xf32, #tpu.memory_space<vmem>>, vector<8x16x128xf32>,
    %c0_11 = arith.constant 0 : index
    %c0_12 = arith.constant 0 : index
    %c0_13 = arith.constant 0 : index
    %8 = vector.load %arg4[%c0_11, %c0_12, %c0_13] : memref<8x18x128xf32, #tpu.memory_space<vmem>>, vector<8x16x128xf32>
    %9 = vector.shape_cast %8 : vector<8x16x128xf32> to vector<128x128xf32>
    %10 = arith.truncf %9 : vector<128x128xf32> to vector<128x128xbf16>
    %c0_14 = arith.constant 0 : index
    %c1_15 = arith.constant 1 : index
    %c0_16 = arith.constant 0 : index
    %11 = vector.load %arg4[%c0_14, %c1_15, %c0_16] : memref<8x18x128xf32, #tpu.memory_space<vmem>>, vector<8x16x128xf32>
    %12 = vector.shape_cast %11 : vector<8x16x128xf32> to vector<128x128xf32>
    %13 = arith.truncf %12 : vector<128x128xf32> to vector<128x128xbf16>
    %c0_17 = arith.constant 0 : index
    %c2 = arith.constant 2 : index
    %c0_18 = arith.constant 0 : index
    %14 = vector.load %arg4[%c0_17, %c2, %c0_18] : memref<8x18x128xf32, #tpu.memory_space<vmem>>, vector<8x16x128xf32>
    %15 = vector.shape_cast %14 : vector<8x16x128xf32> to vector<128x128xf32>
    %16 = arith.truncf %15 : vector<128x128xf32> to vector<128x128xbf16>
    %17 = tpu.concatenate %10, %13, %16 in 1 : vector<128x128xbf16>, vector<128x128xbf16>, vector<128x128xbf16> -> vector<128x384xbf16>
    %c0_19 = arith.constant 0 : index
    %c0_20 = arith.constant 0 : index
    %c0_21 = arith.constant 0 : index
    %18 = vector.load %arg2[%c0_19, %c0_20, %c0_21] : memref<2x384x128xbf16, #tpu.memory_space<vmem>>, vector<1x384x128xbf16>
    %19 = vector.shape_cast %18 : vector<1x384x128xbf16> to vector<384x128xbf16>
    %cst_22 = arith.constant dense<0.000000e+00> : vector<128x128xf32>
    %20 = tpu.matmul %17, %19, %cst_22 {dimension_numbers = #tpu.dot_dimension_numbers<[1], [0], [0], [1], [0, 0, 1, 1], [], []>} : vector<128x384xbf16>, vector<384x128xbf16>, vector<128x128xf32> -> vector<128x128xf32>
    %cst_23 = arith.constant 0.000000e+00 : f32
    %21 = vector.broadcast %cst_23 : f32 to vector<8x2x128xf32>
    %c0_24 = arith.constant 0 : index
    %c0_25 = arith.constant 0 : index
    %c0_26 = arith.constant 0 : index
    %22 = vector.load %arg5[%c0_24, %c0_25, %c0_26] : memref<8x20x128xf32, #tpu.memory_space<vmem>>, vector<8x2x128xf32>
    tpu.vector_store %arg5[%c0_24, %c0_25, %c0_26], %21 {strides = array<i32>} : memref<8x20x128xf32, #tpu.memory_space<vmem>>, vector<8x2x128xf32>,
    %cst_27 = arith.constant 0.000000e+00 : f32
    %23 = vector.broadcast %cst_27 : f32 to vector<8x2x128xf32>
    %c0_28 = arith.constant 0 : index
    %c18 = arith.constant 18 : index
    %c0_29 = arith.constant 0 : index
    %24 = vector.load %arg5[%c0_28, %c18, %c0_29] : memref<8x20x128xf32, #tpu.memory_space<vmem>>, vector<8x2x128xf32>
    tpu.vector_store %arg5[%c0_28, %c18, %c0_29], %23 {strides = array<i32>} : memref<8x20x128xf32, #tpu.memory_space<vmem>>, vector<8x2x128xf32>,
    %cst_30 = arith.constant 0.000000e+00 : f32
    %25 = vector.broadcast %cst_30 : f32 to vector<128x128xf32>
    %26 = arith.maximumf %20, %25 : vector<128x128xf32>
    %27 = vector.shape_cast %26 : vector<128x128xf32> to vector<8x16x128xf32>
    %c0_31 = arith.constant 0 : index
    %c2_32 = arith.constant 2 : index
    %c0_33 = arith.constant 0 : index
    %28 = vector.load %arg5[%c0_31, %c2_32, %c0_33] : memref<8x20x128xf32, #tpu.memory_space<vmem>>, vector<8x16x128xf32>
    tpu.vector_store %arg5[%c0_31, %c2_32, %c0_33], %27 {strides = array<i32>} : memref<8x20x128xf32, #tpu.memory_space<vmem>>, vector<8x16x128xf32>,
    %c0_34 = arith.constant 0 : index
    %c0_35 = arith.constant 0 : index
    %c0_36 = arith.constant 0 : index
    %29 = vector.load %arg5[%c0_34, %c0_35, %c0_36] : memref<8x20x128xf32, #tpu.memory_space<vmem>>, vector<8x16x128xf32>
    %30 = vector.shape_cast %29 : vector<8x16x128xf32> to vector<128x128xf32>
    %31 = arith.truncf %30 : vector<128x128xf32> to vector<128x128xbf16>
    %c0_37 = arith.constant 0 : index
    %c2_38 = arith.constant 2 : index
    %c0_39 = arith.constant 0 : index
    %32 = vector.load %arg5[%c0_37, %c2_38, %c0_39] : memref<8x20x128xf32, #tpu.memory_space<vmem>>, vector<8x16x128xf32>
    %33 = vector.shape_cast %32 : vector<8x16x128xf32> to vector<128x128xf32>
    %34 = arith.truncf %33 : vector<128x128xf32> to vector<128x128xbf16>
    %c0_40 = arith.constant 0 : index
    %c4 = arith.constant 4 : index
    %c0_41 = arith.constant 0 : index
    %35 = vector.load %arg5[%c0_40, %c4, %c0_41] : memref<8x20x128xf32, #tpu.memory_space<vmem>>, vector<8x16x128xf32>
    %36 = vector.shape_cast %35 : vector<8x16x128xf32> to vector<128x128xf32>
    %37 = arith.truncf %36 : vector<128x128xf32> to vector<128x128xbf16>
    %38 = tpu.concatenate %31, %34, %37 in 1 : vector<128x128xbf16>, vector<128x128xbf16>, vector<128x128xbf16> -> vector<128x384xbf16>
    %c1_42 = arith.constant 1 : index
    %c0_43 = arith.constant 0 : index
    %c0_44 = arith.constant 0 : index
    %39 = vector.load %arg2[%c1_42, %c0_43, %c0_44] : memref<2x384x128xbf16, #tpu.memory_space<vmem>>, vector<1x384x128xbf16>
    %40 = vector.shape_cast %39 : vector<1x384x128xbf16> to vector<384x128xbf16>
    %cst_45 = arith.constant dense<0.000000e+00> : vector<128x128xf32>
    %41 = tpu.matmul %38, %40, %cst_45 {dimension_numbers = #tpu.dot_dimension_numbers<[1], [0], [0], [1], [0, 0, 1, 1], [], []>} : vector<128x384xbf16>, vector<384x128xbf16>, vector<128x128xf32> -> vector<128x128xf32>
    %42 = vector.shape_cast %41 : vector<128x128xf32> to vector<8x16x128xf32>
    %43 = arith.addf %42, %0 : vector<8x16x128xf32>
    %c0_46 = arith.constant 0 : index
    %c0_47 = arith.constant 0 : index
    %c0_48 = arith.constant 0 : index
    %44 = vector.load %arg3[%c0_46, %c0_47, %c0_48] : memref<8x16x128xf32, #tpu.memory_space<vmem>>, vector<8x16x128xf32>
    tpu.vector_store %arg3[%c0_46, %c0_47, %c0_48], %43 {strides = array<i32>} : memref<8x16x128xf32, #tpu.memory_space<vmem>>, vector<8x16x128xf32>,
    return
  }
  func.func @transform_0(%arg0: i32) -> (i32, i32, i32) {
    %c0_i32 = arith.constant 0 : i32
    %c0_i32_0 = arith.constant 0 : i32
    %c0_i32_1 = arith.constant 0 : i32
    return %arg0, %c0_i32, %c0_i32_0 : i32, i32, i32
  }
  func.func @transform_1(%arg0: i32) -> (i32, i32, i32) {
    %c0_i32 = arith.constant 0 : i32
    %c0_i32_0 = arith.constant 0 : i32
    %c0_i32_1 = arith.constant 0 : i32
    %c0_i32_2 = arith.constant 0 : i32
    return %c0_i32, %c0_i32_0, %c0_i32_1 : i32, i32, i32
  }
  func.func @transform_2(%arg0: i32) -> (i32, i32, i32) {
    %c0_i32 = arith.constant 0 : i32
    %c0_i32_0 = arith.constant 0 : i32
    %c0_i32_1 = arith.constant 0 : i32
    return %arg0, %c0_i32, %c0_i32_0 : i32, i32, i32
  }
}

</mosaic_0001>

<bundles_post_ra>
// kernel: dilation_embedding_block_forward.1
= control target key start
LH: loop header
LB: loop body
LE: loop exit
PB: predicated region body
PF: predicated region fallthrough
CT: control target
= control target key end

     0   :  { %7 = vsyncpa [#allocation5], 0  ;;  %s2385_s0 = inlined_call_operand.hbm [shape: f32[16,16,128], index: 0, kind: input, shape index: {}]   ;;  %s2386_s1 = inlined_call_operand.hbm [shape: bf16[2,384,128], index: 1, kind: input, shape index: {}]   ;;  %s2387_s2 = inlined_call_operand.hbm [shape: f32[16,16,128], index: 2, kind: output, shape index: {}]  }
   0x1   :  { %9 = vsyncpa [#allocation5 + $0x1], 0 }
   0x2   :  { %10 = vsyncpa [#allocation8], 0 }
   0x3   :  { %11 = vsyncpa [#allocation6], 0 }
   0x4   :  { %13 = vsyncpa [#allocation6 + $0x1], 0  ;;  %s2094_s9 = smov 0   ;;  %s2096_s10 = smov 0  }
   0x5   :  { %s2098_s11 = smov 0   ;;  %s2100_s12 = smov 0  }
   0x6 LB: > { %s2115_s13 = sadd.s32 4294967295, %s2069_s12   ;;  %s1587_s14 = sadd.s32 4294967294, %s2069_s12   ;;  %s2069_s12 = sphi %s2100_s12, %s2397_s12   ;;  %s2065_s11 = sphi %s2098_s11, %s2396_s11   ;;  %s2061_s10 = sphi %s2096_s10, %s2395_s10   ;;  %s2057_s9 = sphi %s2094_s9, %s2394_s9  }
   0x7   : > { %p39_p0 = scmp.ne.s32.totalorder %s2061_s10, %s2057_s9  ;;  %p40_p1 = scmp.eq.s32.totalorder %s2115_s13, 0 }
   0x8   : > { %p84_p2 = scmp.eq.s32.totalorder %s2115_s13, 1  ;;  %p90_p3 = scmp.eq.s32.totalorder %s1587_s14, 1 }
   0x9   : > { %p2124_p4 = por %p40_p1, %p39_p0  ;;  %p1588_p5 = scmp.ge.s32.totalorder %s2069_s12, 1 }
   0xa   : > { %p2129_p6 = por %p90_p3, %p39_p0  ;;  %p97_p7 = scmp.lt.s32.totalorder %s2069_s12, 3 }
   0xb   : > { %s108_s19 = sshll.u32 %s2386_s1, 4  ;;  %s2071_s21 = smov [#allocation7]   ;;  %s109_s19 = int_to_ptr.hbm [resolvable:$true] %s108_s19 }
   0xc   : > { %p2137_p8 = pnand %p1588_p5, %p97_p7  ;;  %s110_s22 = sshll.u32 %s2071_s21, 4  ;;  %s111_s22 = int_to_ptr.vmem [resolvable:$true] %s110_s22 }
   0xd   : > { %s2147_s23 = sadd.s32 1, %s2069_s12   ;;  %s2072_s24 = smov 64  }
   0xe   : > { %p1873_p9 = pneg %p2137_p8  ;;  %s2073_s25 = smov 4  }
   0xf   : > { %s23_s26 = ssub.s32 %s2069_s12, %s2147_s23  ;;  %s26_s27 = sadd.s32 1, %s2065_s11 }
  0x10   : > { %p1874_p10 = pnand %p1873_p9, %p40_p1  ;;  %p24_p12 = scmp.eq.s32.totalorder %s23_s26, 0 }
  0x11   : > { %p33_p13 = scmp.ne.s32.totalorder %s2065_s11, %s2061_s10  ;;  %p34_p0 = scmp.eq.s32.totalorder %s2069_s12, 0 }
  0x12   : > { %1876 = dma.hbm_to_vmem [thread:$0]  (!%p1874_p10), %s109_s19, 6144, %s111_s22, [#allocation8], %s2072_s24, %s2072_s24, %s2073_s25  }
  0x13   : > { %p1886_p3 = scmp.lt.s32.totalorder %s2069_s12, 2  ;;  %p35_p5 = por %p34_p0, %p33_p13 }
  0x14   : > { %s2157_s28 = scalar_select %p24_p12, %s2065_s11, %s26_s27  }
  0x15   : > { %p2161_p7 = por %p84_p2, %p33_p13  ;;  %s124_s30 = sand.u32 1, %s2065_s11  }
  0x16   : > { %s1798_s3 = sshll.u32 %s2069_s12, 7  ;;  %s1591_s4 = sshll.u32 %s124_s30, 7 }
  0x17   : > { %s134_s7 = scalar_lea.hbm %s2385_s0, %s1798_s3  ;;  %s128_s14 = scalar_lea.vmem [#allocation4], %s1591_s4 }
  0x18   : > { %s135_s8 = sshll.u32 %s134_s7, 4  ;;  %s137_s17 = sshll.u32 %s128_s14, 4  ;;  %s136_s8 = int_to_ptr.hbm [resolvable:$true] %s135_s8  ;;  %s138_s17 = int_to_ptr.vmem [resolvable:$true] %s137_s17 }
  0x19   : > { %p2172_p9 = pnand %p1886_p3, %p35_p5  ;;  %s125_s19 = scalar_lea.sflag [#allocation5], %s124_s30 }
  0x1a   : > { %s1969_s21 = sshra.s32 %s136_s8, 4  ;;  %s1976_s26 = scalar_lea.hbm %s2385_s0, 256  ;;  %s1970_s21 = int_to_ptr.hbm [resolvable:$true] %s1969_s21 }
  0x1b   : > { %s1971_s22 = scalar_lea.hbm %s1970_s21, 128  ;;  %p1973_p10 = pneg %p2172_p9 }
  0x1c   : > { %p1972_p2 = scmp.ne.s32.totalorder %s1970_s21, %s1971_s22  ;;  %p1977_p0 = scmp.lt.s32.totalorder %s1970_s21, %s2385_s0 }
  0x1d   : > { %p1978_p3 = scmp.lt.s32.totalorder %s1976_s26, %s1971_s22 }
  0x1e   : > { %p1974_p12 = pnand %p1973_p10, %p1972_p2 }
  0x1f   : > { %p1979_p5 = por %p1978_p3, %p1977_p0 }
  0x20   : > { %p1975_p13 = pneg %p1974_p12 }
  0x22   : > { %p1980_p11 = pnand %p1979_p5, %p1975_p13 }
  0x24   : > { %1983 = shalt.err (!%p1980_p11)
}
  0x25   : > { %s2074_s30 = smov 128   ;;  %s2075_s4 = smov 8  }
  0x26   : > { %1880 = dma.hbm_to_vmem [thread:$0]  (!%p2172_p9), %s136_s8, 2048, %s138_s17, %s125_s19, %s2074_s30, %s2074_s30, %s2075_s4  }
  0x27   : > { %149 = sbr.rel (%p2137_p8) target bundleno = 565 (0x235), region = 28  ;;  %s2189_s5 = sand.u32 (!%p2137_p8), 1, %s2061_s10  }
  0x28   : > { %s1596_s6 = sshll.u32 (!%p2137_p8), %s2189_s5, 7  ;;  %s152_s7 = scalar_lea.sflag (!%p2137_p8), [#allocation5], %s2189_s5 }
  0x29   : > { %s2195_s14 = scalar_lea.vmem (!%p2137_p8), [#allocation4], %s1596_s6 }
  0x2c   : > { %2044 = dma.done.wait (%p2124_p4), %s152_s7, 2048  }
  0x2d   : > { %2046 = vsyncadd (%p2124_p4), %s152_s7, 4294965248 }
  0x2e   : > { %2048 = dma.done.wait (%p40_p1), [#allocation8], 6144  }
  0x2f   : > { %2050 = vsyncadd (%p40_p1), [#allocation8], 4294961152  ;;  %v2076_v0 = vmov 0.0   ;;  %v1806_v1 = vld [vmem:[#allocation7 + $0x38] sm:$0xff]  ;;  %v1805_v3 = vld [vmem:[#allocation7 + $0x30] sm:$0xff]  ;;  %s2318_s15 = scalar_lea.vmem [#allocation9], %s1596_s6 }
  0x30   : > { %204 = vst [vmem:[#allocation2 + $0x60] sm:$0x1] %v2076_v0  ;;  %v1814_v2 = vld [vmem:[#allocation7 + $0x78] sm:$0xff]  ;;  %1849 = vmatpush.bf16.msra.mxu2 %v1806_v1  ;;  %v1813_v4 = vld [vmem:[#allocation7 + $0x70] sm:$0xff]  ;;  %680 = vmatpush.bf16.msra.mxu0 %v1806_v1  ;;  %v192_v5 = vld [vmem:[%s2195_s14 + $0x40] sm:$0xff]  ;;  %s1848_s20 = sshll.u32 %s2115_s13, 7 }
  0x31   : > { %200 = vst [vmem:[#allocation2] sm:$0x1] %v2076_v0  ;;  %1857 = vmatpush.bf16.msra.mxu3 %v1814_v2  ;;  %729 = vmatpush.bf16.msra.mxu1 %v1814_v2  ;;  %v193_v6 = vld [vmem:[%s2195_s14 + $0x48] sm:$0xff]  ;;  %v224_v9 = vmax.f32 %v192_v5, 0.0  ;;  %v1803_v11 = vld [vmem:[#allocation7 + $0x20] sm:$0xff]  ;;  %v1802_v13 = vld [vmem:[#allocation7 + $0x18] sm:$0xff]  ;;  %s1500_s18 = scalar_lea.hbm %s2387_s2, %s1848_s20 }
  0x32   : > { %201 = vst [vmem:[#allocation2 + $0x18] sm:$0x1] %v2076_v0  ;;  %v1804_v7 = vld [vmem:[#allocation7 + $0x28] sm:$0xff]  ;;  %v225_v10 = vmax.f32 %v193_v6, 0.0  ;;  %v1811_v12 = vld [vmem:[#allocation7 + $0x60] sm:$0xff]  ;;  %v1810_v14 = vld [vmem:[#allocation7 + $0x58] sm:$0xff] }
  0x33   : > { %202 = vst [vmem:[#allocation2 + $0x30] sm:$0x1] %v2076_v0  ;;  %v1812_v8 = vld [vmem:[#allocation7 + $0x68] sm:$0xff]  ;;  %v1801_v15 = vld [vmem:[#allocation7 + $0x10] sm:$0xff]  ;;  %v304_v21 = vpack.c.bf16 %v224_v9, %v224_v9  ;;  %v195_v24 = vld [vmem:[%s2195_s14 + $0x58] sm:$0xff]  ;;  %s1501_s19 = sshll.u32 %s2318_s15, 4  ;;  %s1502_s19 = int_to_ptr.vmem [resolvable:$true] %s1501_s19 }
  0x34   : > { %203 = vst [vmem:[#allocation2 + $0x48] sm:$0x1] %v2076_v0  ;;  %1850 = vmatpush.bf16.msra.mxu2 %v1805_v3  ;;  %681 = vmatpush.bf16.msra.mxu0 %v1805_v3  ;;  %v1809_v16 = vld [vmem:[#allocation7 + $0x50] sm:$0xff]  ;;  %v305_v22 = vpack.c.bf16 %v225_v10, %v225_v10  ;;  %v1800_v25 = vld [vmem:[#allocation7 + $0x8] sm:$0xff]  ;;  %v196_v27 = vld [vmem:[%s2195_s14 + $0x60] sm:$0xff]  ;;  %v227_v29 = vmax.f32 %v195_v24, 0.0 }
  0x35   : > { %205 = vst [vmem:[#allocation2 + $0x78] sm:$0x1] %v2076_v0  ;;  %1858 = vmatpush.bf16.msra.mxu3 %v1813_v4  ;;  %730 = vmatpush.bf16.msra.mxu1 %v1813_v4  ;;  %v194_v23 = vld [vmem:[%s2195_s14 + $0x50] sm:$0xff]  ;;  %v1808_v26 = vld [vmem:[#allocation7 + $0x48] sm:$0xff]  ;;  %v416_v33 = vunpack.c.l.b16 %v304_v21  ;;  %v1799_v35 = vld [vmem:[#allocation7] sm:$0xff]  ;;  %v2242_v37 = vmax.f32 %v196_v27, 0.0 }
  0x36   : > { %206 = vst [vmem:[#allocation2 + $0x90] sm:$0x1] %v2076_v0  ;;  %v226_v28 = vmax.f32 %v194_v23, 0.0  ;;  %v197_v30 = vld [vmem:[%s2195_s14 + $0x68] sm:$0xff]  ;;  %v417_v34 = vunpack.c.l.b16 %v305_v22  ;;  %v1807_v36 = vld [vmem:[#allocation7 + $0x40] sm:$0xff]  ;;  %v1822_v38 = vld [vmem:[#allocation7 + $0xb8] sm:$0xff]  ;;  %v307_v53 = vpack.c.bf16 %v227_v29, %v227_v29 }
  0x37   : > { %207 = vst [vmem:[#allocation2 + $0xa8] sm:$0x1] %v2076_v0  ;;  %v2245_v39 = vmax.f32 %v197_v30, 0.0  ;;  %v1821_v42 = vld [vmem:[#allocation7 + $0xb0] sm:$0xff]  ;;  %v199_v44 = vld [vmem:[%s2195_s14 + $0x78] sm:$0xff]  ;;  %v1820_v48 = vld [vmem:[#allocation7 + $0xa8] sm:$0xff] }
  0x38   : > { %208 = vst [vmem:[#allocation2 + $0x11] sm:$0x1] %v2076_v0  ;;  %1851 = vmatpush.bf16.msra.mxu2 %v1804_v7  ;;  %682 = vmatpush.bf16.msra.mxu0 %v1804_v7  ;;  %v428_v41 = vpack.c.b16 %v417_v34, %v416_v33  ;;  %v198_v43 = vld [vmem:[%s2195_s14 + $0x70] sm:$0xff]  ;;  %v2253_v46 = vmax.f32 %v199_v44, 0.0  ;;  %v306_v52 = vpack.c.bf16 %v226_v28, %v226_v28  ;;  %v1819_v54 = vld [vmem:[#allocation7 + $0xa0] sm:$0xff]  ;;  %v419_v58 = vunpack.c.l.b16 %v307_v53  ;;  %v1818_v59 = vld [vmem:[#allocation7 + $0x98] sm:$0xff] }
  0x39   : > { %209 = vst [vmem:[#allocation2 + $0x29] sm:$0x1] %v2076_v0  ;;  %1859 = vmatpush.bf16.msra.mxu3 %v1812_v8  ;;  %731 = vmatpush.bf16.msra.mxu1 %v1812_v8  ;;  %v2251_v45 = vmax.f32 %v198_v43, 0.0  ;;  %v184_v60 = vld [vmem:[%s2195_s14] sm:$0xff]  ;;  %v185_v61 = vld [vmem:[%s2195_s14 + $0x8] sm:$0xff]  ;;  %v1817_v2 = vld [vmem:[#allocation7 + $0x90] sm:$0xff] }
  0x3a   : > { %210 = vst [vmem:[#allocation2 + $0x41] sm:$0x1] %v2076_v0  ;;  %v418_v57 = vunpack.c.l.b16 %v306_v52  ;;  %v217_v1 = vmax.f32 %v185_v61, 0.0  ;;  %v1816_v7 = vld [vmem:[#allocation7 + $0x88] sm:$0xff]  ;;  %v2264_v27 = vld [vmem:[%s2195_s14 + $0x10] sm:$0xff]  ;;  %s1503_s21 = sshll.u32 %s1500_s18, 4  ;;  %s1504_s21 = int_to_ptr.hbm [resolvable:$true] %s1503_s21 }
  0x3b   : > { %211 = vst [vmem:[#allocation2 + $0x59] sm:$0x1] %v2076_v0  ;;  %s1488_s13 = scalar_lea.sflag [#allocation6], %s2189_s5  ;;  %s2013_s22 = sshra.s32 %s1504_s21, 4  ;;  %s2014_s22 = int_to_ptr.hbm [resolvable:$true] %s2013_s22 }
  0x3c   : > { %212 = vst [vmem:[#allocation2 + $0x71] sm:$0x1] %v2076_v0  ;;  %1852 = vmatpush.bf16.msra.mxu2 %v1803_v11  ;;  %683 = vmatpush.bf16.msra.mxu0 %v1803_v11  ;;  %v429_v63 = vpack.c.b16 %v419_v58, %v418_v57  ;;  %v297_v4 = vpack.c.bf16 %v217_v1, %v217_v1  ;;  %v2276_v57 = vld [vmem:[%s2195_s14 + $0x20] sm:$0xff]  ;;  %s2015_s24 = scalar_lea.hbm %s2014_s22, 128  ;;  %s2019_s27 = scalar_lea.hbm %s2387_s2, 256 }
  0x3d   : > { %213 = vst [vmem:[#allocation2 + $0x89] sm:$0x1] %v2076_v0  ;;  %1860 = vmatpush.bf16.msra.mxu3 %v1811_v12  ;;  %732 = vmatpush.bf16.msra.mxu1 %v1811_v12  ;;  %p2016_p1 = scmp.ne.s32.totalorder %s2014_s22, %s2015_s24  ;;  %p2020_p11 = scmp.lt.s32.totalorder %s2014_s22, %s2387_s2 }
  0x3e   : > { %240 = vst [vmem:[#allocation2 + $0x61] sm:$0xff] %v224_v9  ;;  %v409_v9 = vunpack.c.l.b16 %v297_v4  ;;  %p2021_p9 = scmp.lt.s32.totalorder %s2019_s27, %s2015_s24 }
  0x3f   : > { %241 = vst [vmem:[#allocation2 + $0x69] sm:$0xff] %v225_v10  ;;  %v308_v10 = vpack.c.bf16 %v2242_v37, %v2242_v37  ;;  %p2017_p4 = pnand %p2016_p1, %p2161_p7 }
  0x40   : > { %214 = vst [vmem:[#allocation2 + $0xa1] sm:$0x1] %v2076_v0  ;;  %1853 = vmatpush.bf16.msra.mxu2 %v1802_v13  ;;  %684 = vmatpush.bf16.msra.mxu0 %v1802_v13  ;;  %v309_v13 = vpack.c.bf16 %v2245_v39, %v2245_v39  ;;  %p2022_p2 = por %p2021_p9, %p2020_p11 }
  0x41   : > { %215 = vst [vmem:[#allocation2 + $0xb9] sm:$0x1] %v2076_v0  ;;  %1861 = vmatpush.bf16.msra.mxu3 %v1810_v14  ;;  %733 = vmatpush.bf16.msra.mxu1 %v1810_v14  ;;  %p2018_p8 = pneg %p2017_p4 }
  0x42   : > { %827 = vst [vmem:[#allocation3] sm:$0x3] %v2076_v0  ;;  %v421_v23 = vunpack.c.l.b16 %v309_v13 }
  0x43   : > { %828 = vst [vmem:[#allocation3 + $0x18] sm:$0x3] %v2076_v0  ;;  %p2023_p10 = pnand %p2022_p2, %p2018_p8 }
  0x44   : > { %829 = vst [vmem:[#allocation3 + $0x30] sm:$0x3] %v2076_v0  ;;  %1854 = vmatpush.bf16.msra.mxu2 %v1801_v15  ;;  %685 = vmatpush.bf16.msra.mxu0 %v1801_v15 }
  0x45   : > { %830 = vst [vmem:[#allocation3 + $0x48] sm:$0x3] %v2076_v0  ;;  %v256_v17 = vld [vmem:[#allocation2 + $0x60] sm:$0xff]  ;;  %1862 = vmatpush.bf16.msra.mxu3 %v1809_v16  ;;  %734 = vmatpush.bf16.msra.mxu1 %v1809_v16 }
  0x46   : > { %831 = vst [vmem:[#allocation3 + $0x60] sm:$0x3] %v2076_v0  ;;  %v257_v18 = vld [vmem:[#allocation2 + $0x68] sm:$0xff]  ;;  %v272_v19 = vpack.c.bf16 %v256_v17, %v256_v17  ;;  %v1815_v16 = vld [vmem:[#allocation7 + $0x80] sm:$0xff] }
  0x47   : > { %832 = vst [vmem:[#allocation3 + $0x78] sm:$0x3] %v2076_v0  ;;  %v273_v20 = vpack.c.bf16 %v257_v18, %v257_v18 }
  0x48   : > { %833 = vst [vmem:[#allocation3 + $0x90] sm:$0x3] %v2076_v0  ;;  %v368_v31 = vunpack.c.l.b16 %v272_v19  ;;  %1855 = vmatpush.bf16.msra.mxu2 %v1800_v25  ;;  %686 = vmatpush.bf16.msra.mxu0 %v1800_v25  ;;  %v420_v19 = vunpack.c.l.b16 %v308_v10 }
  0x49   : > { %834 = vst [vmem:[#allocation3 + $0xa8] sm:$0x3] %v2076_v0  ;;  %v369_v32 = vunpack.c.l.b16 %v273_v20  ;;  %1863 = vmatpush.bf16.msra.mxu3 %v1808_v26  ;;  %735 = vmatpush.bf16.msra.mxu1 %v1808_v26 }
  0x4a   : > { %835 = vst [vmem:[#allocation3 + $0x12] sm:$0x3] %v2076_v0  ;;  %v430_v30 = vpack.c.b16 %v421_v23, %v420_v19 }
  0x4b   : > { %836 = vst [vmem:[#allocation3 + $0x2a] sm:$0x3] %v2076_v0  ;;  %v380_v40 = vpack.c.b16 %v369_v32, %v368_v31  ;;  %v218_v31 = vmax.f32 %v2264_v27, 0.0 }
  0x4c   : > { %837 = vst [vmem:[#allocation3 + $0x42] sm:$0x3] %v2076_v0  ;;  %1856 = vmatpush.bf16.msra.mxu2 %v1799_v35  ;;  %687 = vmatpush.bf16.msra.mxu0 %v1799_v35 }
  0x4d   : > { %838 = vst [vmem:[#allocation3 + $0x5a] sm:$0x3] %v2076_v0  ;;  %1864 = vmatpush.bf16.msra.mxu3 %v1807_v36  ;;  %736 = vmatpush.bf16.msra.mxu1 %v1807_v36  ;;  %v298_v34 = vpack.c.bf16 %v218_v31, %v218_v31 }
  0x4e   : > { %839 = vst [vmem:[#allocation3 + $0x72] sm:$0x3] %v2076_v0 }
  0x4f   : > { %840 = vst [vmem:[#allocation3 + $0x8a] sm:$0x3] %v2076_v0  ;;  %708 = vmatmul.bf16.vlgmr.msra.gmra.mxu2 %v380_v40 }
  0x50   : > { %841 = vst [vmem:[#allocation3 + $0xa2] sm:$0x3] %v2076_v0  ;;  %778 = vmatpush.bf16.msrb.mxu2 %v1822_v38  ;;  %757 = vmatmul.bf16.vlgmr.msra.gmra.mxu3 %v428_v41  ;;  %v310_v41 = vpack.c.bf16 %v2251_v45, %v2251_v45 }
  0x51   : > { %842 = vst [vmem:[#allocation3 + $0xba] sm:$0x3] %v2076_v0  ;;  %v216_v0 = vmax.f32 %v184_v60, 0.0 }
  0x52   : > { %242 = vst [vmem:[#allocation2 + $0x79] sm:$0xff] %v226_v28  ;;  %v2267_v28 = vld [vmem:[%s2195_s14 + $0x18] sm:$0xff]  ;;  %v422_v52 = vunpack.c.l.b16 %v310_v41 }
  0x53   : > { %243 = vst [vmem:[#allocation2 + $0x81] sm:$0xff] %v227_v29  ;;  %v296_v3 = vpack.c.bf16 %v216_v0, %v216_v0  ;;  %v219_v32 = vmax.f32 %v2267_v28, 0.0 }
  0x54   : > { %244 = vst [vmem:[#allocation2 + $0x91] sm:$0xff] %v2242_v37  ;;  %779 = vmatpush.bf16.msrb.mxu2 %v1821_v42  ;;  %v410_v37 = vunpack.c.l.b16 %v298_v34  ;;  %v311_v42 = vpack.c.bf16 %v2253_v46, %v2253_v46 }
  0x55   : > { %245 = vst [vmem:[#allocation2 + $0x99] sm:$0xff] %v2245_v39  ;;  %v408_v8 = vunpack.c.l.b16 %v296_v3  ;;  %v299_v35 = vpack.c.bf16 %v219_v32, %v219_v32 }
  0x56   : > { %246 = vst [vmem:[#allocation2 + $0xa9] sm:$0xff] %v2251_v45  ;;  %v423_v53 = vunpack.c.l.b16 %v311_v42  ;;  %v2279_v45 = vld [vmem:[%s2195_s14 + $0x28] sm:$0xff] }
  0x57   : > { %247 = vst [vmem:[#allocation2 + $0xb1] sm:$0xff] %v2253_v46  ;;  %v424_v14 = vpack.c.b16 %v409_v9, %v408_v8  ;;  %v411_v38 = vunpack.c.l.b16 %v299_v35  ;;  %v220_v46 = vmax.f32 %v2276_v57, 0.0  ;;  %v221_v60 = vmax.f32 %v2279_v45, 0.0 }
  0x58   : > { %780 = vmatpush.bf16.msrb.mxu2 %v1820_v48  ;;  %232 = vst [vmem:[#allocation2 + $0x1] sm:$0xff] %v216_v0 }
  0x59   : > { %v258_v47 = vld [vmem:[#allocation2 + $0x78] sm:$0xff]  ;;  %233 = vst [vmem:[#allocation2 + $0x9] sm:$0xff] %v217_v1  ;;  %737 = vmatmul.bf16.vlgmr.msra.gmra.mxu1 %v424_v14  ;;  %v425_v43 = vpack.c.b16 %v411_v38, %v410_v37  ;;  %v300_v61 = vpack.c.bf16 %v220_v46, %v220_v46 }
  0x5a   : > { %v259_v49 = vld [vmem:[#allocation2 + $0x80] sm:$0xff]  ;;  %v274_v50 = vpack.c.bf16 %v258_v47, %v258_v47  ;;  %234 = vst [vmem:[#allocation2 + $0x19] sm:$0xff] %v218_v31 }
  0x5b   : > { %v275_v51 = vpack.c.bf16 %v259_v49, %v259_v49  ;;  %v260_v5 = vld [vmem:[#allocation2 + $0x90] sm:$0xff]  ;;  %235 = vst [vmem:[#allocation2 + $0x21] sm:$0xff] %v219_v32  ;;  %v412_v1 = vunpack.c.l.b16 %v300_v61 }
  0x5c   : > { %v370_v55 = vunpack.c.l.b16 %v274_v50  ;;  %781 = vmatpush.bf16.msrb.mxu2 %v1819_v54  ;;  %v261_v6 = vld [vmem:[#allocation2 + $0x98] sm:$0xff]  ;;  %v276_v11 = vpack.c.bf16 %v260_v5, %v260_v5  ;;  %236 = vst [vmem:[#allocation2 + $0x31] sm:$0xff] %v220_v46 }
  0x5d   : > { %v371_v56 = vunpack.c.l.b16 %v275_v51  ;;  %v277_v12 = vpack.c.bf16 %v261_v6, %v261_v6  ;;  %v262_v33 = vld [vmem:[#allocation2 + $0xa8] sm:$0xff]  ;;  %237 = vst [vmem:[#allocation2 + $0x39] sm:$0xff] %v221_v60 }
  0x5e   : > { %v372_v21 = vunpack.c.l.b16 %v276_v11  ;;  %v263_v36 = vld [vmem:[#allocation2 + $0xb0] sm:$0xff]  ;;  %v278_v39 = vpack.c.bf16 %v262_v33, %v262_v33 }
  0x5f   : > { %v381_v62 = vpack.c.b16 %v371_v56, %v370_v55  ;;  %v248_v15 = vld [vmem:[#allocation2] sm:$0xff]  ;;  %v373_v22 = vunpack.c.l.b16 %v277_v12  ;;  %v279_v40 = vpack.c.bf16 %v263_v36, %v263_v36 }
  0x60   : > { %782 = vmatpush.bf16.msrb.mxu2 %v1818_v59  ;;  %762 = vmatmul.bf16.gmra.mxu3 %v429_v63  ;;  %v249_v17 = vld [vmem:[#allocation2 + $0x8] sm:$0xff]  ;;  %v264_v18 = vpack.c.bf16 %v248_v15, %v248_v15  ;;  %v374_v49 = vunpack.c.l.b16 %v278_v39  ;;  %v431_v59 = vpack.c.b16 %v423_v53, %v422_v52  ;;  %v2284_v15 = vld [vmem:[%s2195_s14 + $0x30] sm:$0xff] }
  0x61   : > { %713 = vmatmul.bf16.gmra.mxu2 %v381_v62  ;;  %v265_v20 = vpack.c.bf16 %v249_v17, %v249_v17  ;;  %v382_v29 = vpack.c.b16 %v373_v22, %v372_v21  ;;  %v250_v44 = vld [vmem:[#allocation2 + $0x18] sm:$0xff]  ;;  %v375_v51 = vunpack.c.l.b16 %v279_v40  ;;  %v301_v62 = vpack.c.bf16 %v221_v60, %v221_v60  ;;  %v312_v63 = vld [vmem:[#allocation2 + $0x2] sm:$0xff]  ;;  %v313_v0 = vld [vmem:[#allocation2 + $0xa] sm:$0xff] }
  0x62   : > { %v360_v24 = vunpack.c.l.b16 %v264_v18  ;;  %v251_v47 = vld [vmem:[#allocation2 + $0x20] sm:$0xff]  ;;  %v266_v48 = vpack.c.bf16 %v250_v44, %v250_v44  ;;  %v328_v3 = vpack.c.bf16 %v312_v63, %v312_v63  ;;  %v329_v4 = vpack.c.bf16 %v313_v0, %v313_v0  ;;  %v1830_v0 = vld [vmem:[#allocation7 + $0xf8] sm:$0xff] }
  0x63   : > { %v361_v25 = vunpack.c.l.b16 %v265_v20  ;;  %v267_v50 = vpack.c.bf16 %v251_v47, %v251_v47  ;;  %v383_v58 = vpack.c.b16 %v375_v51, %v374_v49  ;;  %v252_v6 = vld [vmem:[#allocation2 + $0x30] sm:$0xff]  ;;  %v222_v18 = vmax.f32 %v2284_v15, 0.0  ;;  %v314_v22 = vld [vmem:[#allocation2 + $0x1a] sm:$0xff]  ;;  %v315_v23 = vld [vmem:[#allocation2 + $0x22] sm:$0xff]  ;;  %1308 = vmatpush.bf16.msrb.mxu3 %v1830_v0 }
  0x64   : > { %783 = vmatpush.bf16.msrb.mxu2 %v1817_v2  ;;  %v362_v54 = vunpack.c.l.b16 %v266_v48  ;;  %v413_v2 = vunpack.c.l.b16 %v301_v62  ;;  %v268_v8 = vpack.c.bf16 %v252_v6, %v252_v6  ;;  %v456_v10 = vunpack.c.l.b16 %v328_v3  ;;  %v316_v41 = vld [vmem:[#allocation2 + $0x32] sm:$0xff]  ;;  %v317_v42 = vld [vmem:[#allocation2 + $0x3a] sm:$0xff] }
  0x65   : > { %v376_v26 = vpack.c.b16 %v361_v25, %v360_v24  ;;  %v363_v55 = vunpack.c.l.b16 %v267_v50  ;;  %v457_v11 = vunpack.c.l.b16 %v329_v4  ;;  %238 = vst [vmem:[#allocation2 + $0x49] sm:$0xff] %v222_v18  ;;  %v302_v20 = vpack.c.bf16 %v222_v18, %v222_v18  ;;  %v1838_v6 = vld [vmem:[#allocation7 + $0x138] sm:$0xff] }
  0x66   : > { %v426_v5 = vpack.c.b16 %v413_v2, %v412_v1  ;;  %v364_v12 = vunpack.c.l.b16 %v268_v8  ;;  %v333_v44 = vpack.c.bf16 %v317_v42, %v317_v42  ;;  %v322_v1 = vld [vmem:[#allocation2 + $0x7a] sm:$0xff]  ;;  %v323_v2 = vld [vmem:[#allocation2 + $0x82] sm:$0xff]  ;;  %1357 = vmatpush.bf16.msrb.mxu0 %v1838_v6  ;;  %v324_v18 = vld [vmem:[#allocation2 + $0x92] sm:$0xff] }
  0x67   : > { %688 = vmatmul.bf16.vlgmr.msra.gmra.mxu0 %v376_v26  ;;  %v377_v56 = vpack.c.b16 %v363_v55, %v362_v54  ;;  %v472_v17 = vpack.c.b16 %v457_v11, %v456_v10  ;;  %v414_v24 = vunpack.c.l.b16 %v302_v20  ;;  %v330_v26 = vpack.c.bf16 %v314_v22, %v314_v22  ;;  %v1846_v8 = vld [vmem:[#allocation7 + $0x178] sm:$0xff] }
  0x68   : > { %784 = vmatpush.bf16.msrb.mxu2 %v1816_v7  ;;  %v253_v7 = vld [vmem:[#allocation2 + $0x38] sm:$0xff]  ;;  %v461_v48 = vunpack.c.l.b16 %v333_v44  ;;  %v338_v4 = vpack.c.bf16 %v322_v1, %v322_v1  ;;  %1406 = vmatpush.bf16.msrb.mxu1 %v1846_v8 }
  0x69   : > { %742 = vmatmul.bf16.gmra.mxu1 %v425_v43  ;;  %v269_v9 = vpack.c.bf16 %v253_v7, %v253_v7  ;;  %v458_v35 = vunpack.c.l.b16 %v330_v26  ;;  %v332_v43 = vpack.c.bf16 %v316_v41, %v316_v41  ;;  %v1829_v7 = vld [vmem:[#allocation7 + $0xf0] sm:$0xff]  ;;  %v1842_v44 = vld [vmem:[#allocation7 + $0x158] sm:$0xff] }
  0x6a   : > { %1309 = vmatpush.bf16.msrb.mxu3 %v1829_v7 }
  0x6b   : > { %v365_v13 = vunpack.c.l.b16 %v269_v9  ;;  %v460_v47 = vunpack.c.l.b16 %v332_v43  ;;  %v466_v9 = vunpack.c.l.b16 %v338_v4  ;;  %v1825_v43 = vld [vmem:[#allocation7 + $0xd0] sm:$0xff] }
  0x6c   : > { %785 = vmatpush.bf16.msrb.mxu2 %v1815_v16  ;;  %v2287_v16 = vld [vmem:[%s2195_s14 + $0x38] sm:$0xff]  ;;  %v254_v31 = vld [vmem:[#allocation2 + $0x48] sm:$0xff] }
  0x6d   : > { %v378_v14 = vpack.c.b16 %v365_v13, %v364_v12  ;;  %v223_v19 = vmax.f32 %v2287_v16, 0.0  ;;  %v270_v33 = vpack.c.bf16 %v254_v31, %v254_v31  ;;  %v474_v49 = vpack.c.b16 %v461_v48, %v460_v47  ;;  %v1837_v13 = vld [vmem:[#allocation7 + $0x130] sm:$0xff] }
  0x6e   : > { %1358 = vmatpush.bf16.msrb.mxu0 %v1837_v13  ;;  %v1833_v47 = vld [vmem:[#allocation7 + $0x110] sm:$0xff] }
  0x6f   : > { %239 = vst [vmem:[#allocation2 + $0x51] sm:$0xff] %v223_v19  ;;  %v303_v21 = vpack.c.bf16 %v223_v19, %v223_v19  ;;  %v366_v37 = vunpack.c.l.b16 %v270_v33  ;;  %v325_v19 = vld [vmem:[#allocation2 + $0x9a] sm:$0xff] }
  0x70   : > { %767 = vmatmul.bf16.gmra.mxu3 %v430_v30  ;;  %v341_v22 = vpack.c.bf16 %v325_v19, %v325_v19  ;;  %v1826_v33 = vld [vmem:[#allocation7 + $0xd8] sm:$0xff] }
  0x71   : > { %718 = vmatmul.bf16.gmra.mxu2 %v382_v29  ;;  %v415_v25 = vunpack.c.l.b16 %v303_v21  ;;  %v331_v29 = vpack.c.bf16 %v315_v23, %v315_v23  ;;  %v340_v21 = vpack.c.bf16 %v324_v18, %v324_v18  ;;  %v1836_v23 = vld [vmem:[#allocation7 + $0x128] sm:$0xff] }
  0x72   : > { %1359 = vmatpush.bf16.msrb.mxu0 %v1836_v23 }
  0x73   : > { %v427_v30 = vpack.c.b16 %v415_v25, %v414_v24  ;;  %v459_v36 = vunpack.c.l.b16 %v331_v29  ;;  %v1827_v24 = vld [vmem:[#allocation7 + $0xe0] sm:$0xff]  ;;  %v1844_v25 = vld [vmem:[#allocation7 + $0x168] sm:$0xff]  ;;  %v468_v26 = vunpack.c.l.b16 %v340_v21  ;;  %v469_v29 = vunpack.c.l.b16 %v341_v22 }
  0x75   : > { %v473_v40 = vpack.c.b16 %v459_v36, %v458_v35  ;;  %v478_v31 = vpack.c.b16 %v469_v29, %v468_v26  ;;  %v326_v35 = vld [vmem:[#allocation2 + $0xaa] sm:$0xff]  ;;  %v327_v36 = vld [vmem:[#allocation2 + $0xb2] sm:$0xff] }
  0x76   : > { %v255_v32 = vld [vmem:[#allocation2 + $0x50] sm:$0xff] }
  0x77   : > { %693 = vmatmul.bf16.gmra.mxu0 %v377_v56  ;;  %v271_v34 = vpack.c.bf16 %v255_v32, %v255_v32  ;;  %v318_v50 = vld [vmem:[#allocation2 + $0x4a] sm:$0xff]  ;;  %v319_v51 = vld [vmem:[#allocation2 + $0x52] sm:$0xff]  ;;  %v1835_v32 = vld [vmem:[#allocation7 + $0x120] sm:$0xff] }
  0x78   : > { %v334_v52 = vpack.c.bf16 %v318_v50, %v318_v50  ;;  %v335_v53 = vpack.c.bf16 %v319_v51, %v319_v51  ;;  %1360 = vmatpush.bf16.msrb.mxu0 %v1835_v32  ;;  %v1832_v50 = vld [vmem:[#allocation7 + $0x108] sm:$0xff] }
  0x79   : > { %747 = vmatmul.bf16.gmra.mxu1 %v426_v5  ;;  %v367_v38 = vunpack.c.l.b16 %v271_v34  ;;  %v339_v5 = vpack.c.bf16 %v323_v2, %v323_v2  ;;  %v1843_v34 = vld [vmem:[#allocation7 + $0x160] sm:$0xff] }
  0x7a   : > { %v462_v54 = vunpack.c.l.b16 %v334_v52  ;;  %v463_v55 = vunpack.c.l.b16 %v335_v53  ;;  %v1824_v53 = vld [vmem:[#allocation7 + $0xc8] sm:$0xff] }
  0x7b   : > { %v379_v39 = vpack.c.b16 %v367_v38, %v366_v37  ;;  %v467_v10 = vunpack.c.l.b16 %v339_v5  ;;  %v342_v38 = vpack.c.bf16 %v326_v35, %v326_v35 }
  0x7c   : > { %v475_v56 = vpack.c.b16 %v463_v55, %v462_v54  ;;  %v1841_v54 = vld [vmem:[#allocation7 + $0x150] sm:$0xff]  ;;  %v1831_v55 = vld [vmem:[#allocation7 + $0x100] sm:$0xff] }
  0x7d   : > { %v477_v12 = vpack.c.b16 %v467_v10, %v466_v9  ;;  %v470_v41 = vunpack.c.l.b16 %v342_v38 }
  0x80   : > { %772 = vmatmul.bf16.gmra.mxu3 %v431_v59  ;;  %v321_v59 = vld [vmem:[#allocation2 + $0x6a] sm:$0xff] }
  0x81   : > { %723 = vmatmul.bf16.gmra.mxu2 %v383_v58  ;;  %v320_v58 = vld [vmem:[#allocation2 + $0x62] sm:$0xff]  ;;  %v337_v60 = vpack.c.bf16 %v321_v59, %v321_v59 }
  0x82   : > { %v336_v46 = vpack.c.bf16 %v320_v58, %v320_v58  ;;  %v1840_v58 = vld [vmem:[#allocation7 + $0x148] sm:$0xff]  ;;  %v1823_v59 = vld [vmem:[#allocation7 + $0xc0] sm:$0xff] }
  0x83   : > { %v465_v62 = vunpack.c.l.b16 %v337_v60 }
  0x84   : > { %v464_v61 = vunpack.c.l.b16 %v336_v46  ;;  %v1839_v46 = vld [vmem:[#allocation7 + $0x140] sm:$0xff] }
  0x86   : > { %v476_v63 = vpack.c.b16 %v465_v62, %v464_v61 }
  0x87   : > { %698 = vmatmul.bf16.gmra.mxu0 %v378_v14  ;;  %v1828_v14 = vld [vmem:[#allocation7 + $0xe8] sm:$0xff] }
  0x88   : > { %1310 = vmatpush.bf16.msrb.mxu3 %v1828_v14 }
  0x89   : > { %752 = vmatmul.bf16.gmra.mxu1 %v427_v30 }
  0x8c   : > { %1311 = vmatpush.bf16.msrb.mxu3 %v1827_v24 }
  0x90   : > { %1312 = vmatpush.bf16.msrb.mxu3 %v1826_v33 }
  0x91   : > { %786 = vmatmul.bf16.vlgmr.msrb.gmra.mxu2 %v472_v17  ;;  %v1845_v17 = vld [vmem:[#allocation7 + $0x170] sm:$0xff] }
  0x92   : > { %1407 = vmatpush.bf16.msrb.mxu1 %v1845_v17 }
  0x94   : > { %1313 = vmatpush.bf16.msrb.mxu3 %v1825_v43 }
  0x96   : > { %1408 = vmatpush.bf16.msrb.mxu1 %v1844_v25 }
  0x97   : > { %703 = vmatmul.bf16.gmra.mxu0 %v379_v39  ;;  %v343_v39 = vpack.c.bf16 %v327_v36, %v327_v36 }
  0x98   : > { %1314 = vmatpush.bf16.msrb.mxu3 %v1824_v53 }
  0x99   : > { %v471_v42 = vunpack.c.l.b16 %v343_v39 }
  0x9a   : > { %1409 = vmatpush.bf16.msrb.mxu1 %v1843_v34 }
  0x9c   : > { %1315 = vmatpush.bf16.msrb.mxu3 %v1823_v59 }
  0x9e   : > { %1410 = vmatpush.bf16.msrb.mxu1 %v1842_v44 }
  0xa1   : > { %791 = vmatmul.bf16.gmra.mxu2 %v473_v40  ;;  %v1834_v40 = vld [vmem:[#allocation7 + $0x118] sm:$0xff] }
  0xa2   : > { %1361 = vmatpush.bf16.msrb.mxu0 %v1834_v40  ;;  %1411 = vmatpush.bf16.msrb.mxu1 %v1841_v54 }
  0xa6   : > { %1362 = vmatpush.bf16.msrb.mxu0 %v1833_v47  ;;  %1412 = vmatpush.bf16.msrb.mxu1 %v1840_v58 }
  0xaa   : > { %1363 = vmatpush.bf16.msrb.mxu0 %v1832_v50  ;;  %1413 = vmatpush.bf16.msrb.mxu1 %v1839_v46 }
  0xae   : > { %1364 = vmatpush.bf16.msrb.mxu0 %v1831_v55 }
  0xb1   : > { %796 = vmatmul.bf16.gmra.mxu2 %v474_v49  ;;  %v479_v49 = vpack.c.b16 %v471_v42, %v470_v41 }
  0xc1   : > { %801 = vmatmul.bf16.gmra.mxu2 %v475_v56 }
  0xd1   : > { %806 = vmatmul.bf16.gmra.mxu2 %v476_v63 }
  0xd2   : > { %v2291_v3 = vpop.f32.mrf.mxu2 }
  0xd6   : > { %v738_v52 = vpop.f32.mrf.mxu1 }
  0xda   : > { %v2293_v11 = vpop.f32.mrf.mxu2 }
  0xde   : > { %v740_v61 = vpop.f32.mrf.mxu1 }
  0xe1   : > { %811 = vmatmul.bf16.gmra.mxu2 %v477_v12 }
  0xe4   : > { %v2295_v20 = vpop.f32.mrf.mxu2  ;;  %v689_v51 = vpop.f32.mrf.mxu0 }
  0xe5   : > { %v739_v63 = vadd.f32 %v738_v52, %v689_v51 }
  0xe6   : > { %v743_v4 = vpop.f32.mrf.mxu1 }
  0xec   : > { %v2297_v30 = vpop.f32.mrf.mxu2  ;;  %v691_v60 = vpop.f32.mrf.mxu0 }
  0xed   : > { %v741_v6 = vadd.f32 %v740_v61, %v691_v60 }
  0xee   : > { %v745_v12 = vpop.f32.mrf.mxu1 }
  0xf1   : > { %816 = vmatmul.bf16.gmra.mxu2 %v478_v31 }
  0xf4   : > { %v2299_v37 = vpop.f32.mrf.mxu2  ;;  %v694_v2 = vpop.f32.mrf.mxu0 }
  0xf5   : > { %v744_v14 = vadd.f32 %v743_v4, %v694_v2 }
  0xf6   : > { %v748_v34 = vpop.f32.mrf.mxu1 }
  0xfc   : > { %v2301_v48 = vpop.f32.mrf.mxu2  ;;  %v696_v10 = vpop.f32.mrf.mxu0 }
  0xfd   : > { %v746_v39 = vadd.f32 %v745_v12, %v696_v10 }
  0xfe   : > { %v750_v58 = vpop.f32.mrf.mxu1 }
 0x101   : > { %821 = vmatmul.bf16.gmra.mxu2 %v479_v49 }
 0x104   : > { %v2303_v56 = vpop.f32.mrf.mxu2  ;;  %v699_v33 = vpop.f32.mrf.mxu0 }
 0x105   : > { %v749_v53 = vadd.f32 %v748_v34, %v699_v33 }
 0x10c   : > { %v2305_v62 = vpop.f32.mrf.mxu2  ;;  %v701_v55 = vpop.f32.mrf.mxu0 }
 0x10d   : > { %v751_v10 = vadd.f32 %v750_v58, %v701_v55 }
 0x114   : > { %v787_v0 = vpop.f32.mrf.mxu2 }
 0x115   : > { %v788_v1 = vadd.f32 %v787_v0, %v739_v63 }
 0x117   : > { %v843_v5 = vmax.f32 %v788_v1, 0.0 }
 0x119   : > { %859 = vst [vmem:[#allocation3 + $0x2] sm:$0xff] %v843_v5  ;;  %v923_v13 = vpack.c.bf16 %v843_v5, %v843_v5 }
 0x11b   : > { %v1035_v18 = vunpack.c.l.b16 %v923_v13 }
 0x11c   : > { %v789_v7 = vpop.f32.mrf.mxu2 }
 0x11d   : > { %v790_v8 = vadd.f32 %v789_v7, %v741_v6 }
 0x11f   : > { %v844_v9 = vmax.f32 %v790_v8, 0.0 }
 0x120   : > { %v875_v22 = vld [vmem:[#allocation3] sm:$0xff] }
 0x121   : > { %860 = vst [vmem:[#allocation3 + $0xa] sm:$0xff] %v844_v9  ;;  %v924_v17 = vpack.c.bf16 %v844_v9, %v844_v9  ;;  %v891_v26 = vpack.c.bf16 %v875_v22, %v875_v22 }
 0x123   : > { %v1036_v19 = vunpack.c.l.b16 %v924_v17  ;;  %v987_v40 = vunpack.c.l.b16 %v891_v26 }
 0x124   : > { %v792_v21 = vpop.f32.mrf.mxu2 }
 0x125   : > { %v793_v23 = vadd.f32 %v792_v21, %v744_v14  ;;  %v1051_v24 = vpack.c.b16 %v1036_v19, %v1035_v18  ;;  %v704_v19 = vpop.f32.mrf.mxu0  ;;  %v753_v21 = vpop.f32.mrf.mxu1 }
 0x127   : > { %v845_v25 = vmax.f32 %v793_v23, 0.0  ;;  %1365 = vmatmul.bf16.vlgmr.msrb.gmra.mxu0 %v1051_v24 }
 0x128   : > { %v876_v29 = vld [vmem:[#allocation3 + $0x8] sm:$0xff] }
 0x129   : > { %v939_v31 = vld [vmem:[#allocation3 + $0x4] sm:$0xff]  ;;  %v940_v32 = vld [vmem:[#allocation3 + $0xc] sm:$0xff]  ;;  %861 = vst [vmem:[#allocation3 + $0x1a] sm:$0xff] %v845_v25  ;;  %v892_v35 = vpack.c.bf16 %v876_v29, %v876_v29  ;;  %v925_v52 = vpack.c.bf16 %v845_v25, %v845_v25  ;;  %v758_v29 = vpop.f32.mrf.mxu3 }
 0x12a   : > { %v955_v36 = vpack.c.bf16 %v939_v31, %v939_v31  ;;  %v956_v38 = vpack.c.bf16 %v940_v32, %v940_v32  ;;  %v754_v31 = vadd.f32 %v753_v21, %v704_v19 }
 0x12b   : > { %v988_v41 = vunpack.c.l.b16 %v892_v35  ;;  %v1037_v59 = vunpack.c.l.b16 %v925_v52 }
 0x12c   : > { %v1083_v42 = vunpack.c.l.b16 %v955_v36  ;;  %v1084_v43 = vunpack.c.l.b16 %v956_v38  ;;  %v794_v44 = vpop.f32.mrf.mxu2 }
 0x12d   : > { %v795_v47 = vadd.f32 %v794_v44, %v746_v39  ;;  %v1003_v49 = vpack.c.b16 %v988_v41, %v987_v40  ;;  %v706_v40 = vpop.f32.mrf.mxu0  ;;  %v755_v41 = vpop.f32.mrf.mxu1 }
 0x12e   : > { %v1099_v50 = vpack.c.b16 %v1084_v43, %v1083_v42 }
 0x12f   : > { %v846_v51 = vmax.f32 %v795_v47, 0.0  ;;  %1316 = vmatmul.bf16.vlgmr.msrb.gmra.mxu3 %v1003_v49 }
 0x130   : > { %1414 = vmatmul.bf16.vlgmr.msrb.gmra.mxu1 %v1099_v50  ;;  %v877_v61 = vld [vmem:[#allocation3 + $0x18] sm:$0xff] }
 0x131   : > { %862 = vst [vmem:[#allocation3 + $0x22] sm:$0xff] %v846_v51  ;;  %v926_v54 = vpack.c.bf16 %v846_v51, %v846_v51  ;;  %v893_v2 = vpack.c.bf16 %v877_v61, %v877_v61 }
 0x133   : > { %v1038_v46 = vunpack.c.l.b16 %v926_v54  ;;  %v989_v12 = vunpack.c.l.b16 %v893_v2  ;;  %v760_v54 = vpop.f32.mrf.mxu3 }
 0x134   : > { %v797_v60 = vpop.f32.mrf.mxu2 }
 0x135   : > { %v798_v63 = vadd.f32 %v797_v60, %v749_v53  ;;  %v1052_v0 = vpack.c.b16 %v1038_v46, %v1037_v59  ;;  %v756_v53 = vadd.f32 %v755_v41, %v706_v40 }
 0x137   : > { %v847_v1 = vmax.f32 %v798_v63, 0.0  ;;  %1370 = vmatmul.bf16.gmra.mxu0 %v1052_v0 }
 0x138   : > { %v878_v4 = vld [vmem:[#allocation3 + $0x20] sm:$0xff] }
 0x139   : > { %v941_v5 = vld [vmem:[#allocation3 + $0x1c] sm:$0xff]  ;;  %v942_v6 = vld [vmem:[#allocation3 + $0x24] sm:$0xff]  ;;  %863 = vst [vmem:[#allocation3 + $0x32] sm:$0xff] %v847_v1  ;;  %v894_v7 = vpack.c.bf16 %v878_v4, %v878_v4  ;;  %v927_v26 = vpack.c.bf16 %v847_v1, %v847_v1 }
 0x13a   : > { %v957_v8 = vpack.c.bf16 %v941_v5, %v941_v5  ;;  %v958_v9 = vpack.c.bf16 %v942_v6, %v942_v6  ;;  %v759_v5 = vadd.f32 %v758_v29, %v2291_v3 }
 0x13b   : > { %v990_v13 = vunpack.c.l.b16 %v894_v7  ;;  %v1039_v33 = vunpack.c.l.b16 %v927_v26 }
 0x13c   : > { %v1085_v14 = vunpack.c.l.b16 %v957_v8  ;;  %v1086_v17 = vunpack.c.l.b16 %v958_v9  ;;  %v799_v18 = vpop.f32.mrf.mxu2 }
 0x13d   : > { %v800_v22 = vadd.f32 %v799_v18, %v751_v10  ;;  %v1004_v23 = vpack.c.b16 %v990_v13, %v989_v12  ;;  %v763_v10 = vpop.f32.mrf.mxu3 }
 0x13e   : > { %v1100_v24 = vpack.c.b16 %v1086_v17, %v1085_v14  ;;  %v764_v41 = vadd.f32 %v763_v10, %v2295_v20 }
 0x13f   : > { %v848_v25 = vmax.f32 %v800_v22, 0.0  ;;  %1321 = vmatmul.bf16.gmra.mxu3 %v1004_v23 }
 0x140   : > { %1419 = vmatmul.bf16.gmra.mxu1 %v1100_v24  ;;  %v879_v36 = vld [vmem:[#allocation3 + $0x30] sm:$0xff] }
 0x141   : > { %864 = vst [vmem:[#allocation3 + $0x3a] sm:$0xff] %v848_v25  ;;  %v928_v32 = vpack.c.bf16 %v848_v25, %v848_v25  ;;  %v895_v43 = vpack.c.bf16 %v879_v36, %v879_v36  ;;  %v761_v25 = vadd.f32 %v760_v54, %v2293_v11 }
 0x143   : > { %v1040_v34 = vunpack.c.l.b16 %v928_v32  ;;  %v991_v55 = vunpack.c.l.b16 %v895_v43 }
 0x144   : > { %v802_v35 = vpop.f32.mrf.mxu2 }
 0x145   : > { %v803_v38 = vadd.f32 %v802_v35, %v754_v31  ;;  %v1053_v39 = vpack.c.b16 %v1040_v34, %v1039_v33  ;;  %v765_v36 = vpop.f32.mrf.mxu3 }
 0x147   : > { %v849_v42 = vmax.f32 %v803_v38, 0.0  ;;  %1375 = vmatmul.bf16.gmra.mxu0 %v1053_v39 }
 0x148   : > { %v880_v44 = vld [vmem:[#allocation3 + $0x38] sm:$0xff] }
 0x149   : > { %v943_v47 = vld [vmem:[#allocation3 + $0x34] sm:$0xff]  ;;  %v944_v49 = vld [vmem:[#allocation3 + $0x3c] sm:$0xff]  ;;  %865 = vst [vmem:[#allocation3 + $0x4a] sm:$0xff] %v849_v42  ;;  %v896_v50 = vpack.c.bf16 %v880_v44, %v880_v44  ;;  %v929_v2 = vpack.c.bf16 %v849_v42, %v849_v42 }
 0x14a   : > { %v959_v51 = vpack.c.bf16 %v943_v47, %v943_v47  ;;  %v960_v52 = vpack.c.bf16 %v944_v49, %v944_v49 }
 0x14b   : > { %v992_v58 = vunpack.c.l.b16 %v896_v50  ;;  %v1041_v6 = vunpack.c.l.b16 %v929_v2 }
 0x14c   : > { %v1087_v59 = vunpack.c.l.b16 %v959_v51  ;;  %v1088_v46 = vunpack.c.l.b16 %v960_v52  ;;  %v804_v60 = vpop.f32.mrf.mxu2 }
 0x14d   : > { %v805_v61 = vadd.f32 %v804_v60, %v756_v53  ;;  %v1005_v63 = vpack.c.b16 %v992_v58, %v991_v55  ;;  %v768_v55 = vpop.f32.mrf.mxu3  ;;  %v766_v60 = vadd.f32 %v765_v36, %v2297_v30 }
 0x14e   : > { %v1101_v0 = vpack.c.b16 %v1088_v46, %v1087_v59 }
 0x14f   : > { %v850_v1 = vmax.f32 %v805_v61, 0.0  ;;  %1326 = vmatmul.bf16.gmra.mxu3 %v1005_v63 }
 0x150   : > { %1424 = vmatmul.bf16.gmra.mxu1 %v1101_v0  ;;  %v881_v9 = vld [vmem:[#allocation3 + $0x48] sm:$0xff] }
 0x151   : > { %866 = vst [vmem:[#allocation3 + $0x52] sm:$0xff] %v850_v1  ;;  %v930_v4 = vpack.c.bf16 %v850_v1, %v850_v1  ;;  %v897_v17 = vpack.c.bf16 %v881_v9, %v881_v9  ;;  %v769_v9 = vadd.f32 %v768_v55, %v2299_v37 }
 0x153   : > { %v1042_v7 = vunpack.c.l.b16 %v930_v4  ;;  %v993_v3 = vunpack.c.l.b16 %v897_v17 }
 0x154   : > { %v807_v8 = vpop.f32.mrf.mxu2 }
 0x155   : > { %v808_v12 = vadd.f32 %v807_v8, %v759_v5  ;;  %v1054_v13 = vpack.c.b16 %v1042_v7, %v1041_v6  ;;  %v770_v10 = vpop.f32.mrf.mxu3 }
 0x157   : > { %v851_v14 = vmax.f32 %v808_v12, 0.0  ;;  %1380 = vmatmul.bf16.gmra.mxu0 %v1054_v13 }
 0x158   : > { %v882_v18 = vld [vmem:[#allocation3 + $0x50] sm:$0xff] }
 0x159   : > { %v945_v19 = vld [vmem:[#allocation3 + $0x4c] sm:$0xff]  ;;  %v946_v21 = vld [vmem:[#allocation3 + $0x54] sm:$0xff]  ;;  %867 = vst [vmem:[#allocation3 + $0x62] sm:$0xff] %v851_v14  ;;  %v898_v22 = vpack.c.bf16 %v882_v18, %v882_v18  ;;  %v931_v39 = vpack.c.bf16 %v851_v14, %v851_v14 }
 0x15a   : > { %v961_v23 = vpack.c.bf16 %v945_v19, %v945_v19  ;;  %v962_v24 = vpack.c.bf16 %v946_v21, %v946_v21 }
 0x15b   : > { %v994_v26 = vunpack.c.l.b16 %v898_v22  ;;  %v1043_v42 = vunpack.c.l.b16 %v931_v39 }
 0x15c   : > { %v1089_v29 = vunpack.c.l.b16 %v961_v23  ;;  %v1090_v31 = vunpack.c.l.b16 %v962_v24  ;;  %v809_v32 = vpop.f32.mrf.mxu2 }
 0x15d   : > { %v810_v33 = vadd.f32 %v809_v32, %v761_v25  ;;  %v1006_v34 = vpack.c.b16 %v994_v26, %v993_v3 }
 0x15e   : > { %v1102_v35 = vpack.c.b16 %v1090_v31, %v1089_v29  ;;  %v771_v29 = vadd.f32 %v770_v10, %v2301_v48 }
 0x15f   : > { %v852_v38 = vmax.f32 %v810_v33, 0.0  ;;  %1331 = vmatmul.bf16.gmra.mxu3 %v1006_v34 }
 0x160   : > { %1429 = vmatmul.bf16.gmra.mxu1 %v1102_v35  ;;  %v883_v44 = vld [vmem:[#allocation3 + $0x60] sm:$0xff]  ;;  %v773_v35 = vpop.f32.mrf.mxu3 }
 0x161   : > { %868 = vst [vmem:[#allocation3 + $0x6a] sm:$0xff] %v852_v38  ;;  %v932_v40 = vpack.c.bf16 %v852_v38, %v852_v38  ;;  %v899_v51 = vpack.c.bf16 %v883_v44, %v883_v44 }
 0x163   : > { %v1044_v43 = vunpack.c.l.b16 %v932_v40  ;;  %v995_v20 = vunpack.c.l.b16 %v899_v51 }
 0x164   : > { %v812_v11 = vpop.f32.mrf.mxu2 }
 0x165   : > { %v813_v47 = vadd.f32 %v812_v11, %v764_v41  ;;  %v1055_v49 = vpack.c.b16 %v1044_v43, %v1043_v42  ;;  %v774_v43 = vadd.f32 %v773_v35, %v2303_v56 }
 0x167   : > { %v853_v50 = vmax.f32 %v813_v47, 0.0  ;;  %1385 = vmatmul.bf16.gmra.mxu0 %v1055_v49 }
 0x168   : > { %v884_v52 = vld [vmem:[#allocation3 + $0x68] sm:$0xff]  ;;  %v775_v51 = vpop.f32.mrf.mxu3 }
 0x169   : > { %v947_v53 = vld [vmem:[#allocation3 + $0x64] sm:$0xff]  ;;  %v948_v54 = vld [vmem:[#allocation3 + $0x6c] sm:$0xff]  ;;  %869 = vst [vmem:[#allocation3 + $0x7a] sm:$0xff] %v853_v50  ;;  %v900_v58 = vpack.c.bf16 %v884_v52, %v884_v52  ;;  %v933_v7 = vpack.c.bf16 %v853_v50, %v853_v50 }
 0x16a   : > { %v963_v59 = vpack.c.bf16 %v947_v53, %v947_v53  ;;  %v964_v46 = vpack.c.bf16 %v948_v54, %v948_v54 }
 0x16b   : > { %v996_v61 = vunpack.c.l.b16 %v900_v58  ;;  %v1045_v12 = vunpack.c.l.b16 %v933_v7 }
 0x16c   : > { %v1091_v63 = vunpack.c.l.b16 %v963_v59  ;;  %v1092_v0 = vunpack.c.l.b16 %v964_v46  ;;  %v814_v1 = vpop.f32.mrf.mxu2 }
 0x16d   : > { %v815_v2 = vadd.f32 %v814_v1, %v766_v60  ;;  %v1007_v4 = vpack.c.b16 %v996_v61, %v995_v20  ;;  %v776_v20 = vadd.f32 %v775_v51, %v2305_v62 }
 0x16e   : > { %v1103_v5 = vpack.c.b16 %v1092_v0, %v1091_v63 }
 0x16f   : > { %v854_v6 = vmax.f32 %v815_v2, 0.0  ;;  %1336 = vmatmul.bf16.gmra.mxu3 %v1007_v4 }
 0x170   : > { %1434 = vmatmul.bf16.gmra.mxu1 %v1103_v5  ;;  %v885_v14 = vld [vmem:[#allocation3 + $0x78] sm:$0xff] }
 0x171   : > { %870 = vst [vmem:[#allocation3 + $0x82] sm:$0xff] %v854_v6  ;;  %v934_v8 = vpack.c.bf16 %v854_v6, %v854_v6  ;;  %v901_v21 = vpack.c.bf16 %v885_v14, %v885_v14 }
 0x173   : > { %v1046_v13 = vunpack.c.l.b16 %v934_v8  ;;  %v997_v37 = vunpack.c.l.b16 %v901_v21 }
 0x174   : > { %v817_v30 = vpop.f32.mrf.mxu2 }
 0x175   : > { %v818_v17 = vadd.f32 %v817_v30, %v769_v9  ;;  %v1056_v18 = vpack.c.b16 %v1046_v13, %v1045_v12 }
 0x177   : > { %v855_v19 = vmax.f32 %v818_v17, 0.0  ;;  %1390 = vmatmul.bf16.gmra.mxu0 %v1056_v18 }
 0x178   : > { %v886_v22 = vld [vmem:[#allocation3 + $0x80] sm:$0xff] }
 0x179   : > { %v949_v23 = vld [vmem:[#allocation3 + $0x7c] sm:$0xff]  ;;  %v950_v24 = vld [vmem:[#allocation3 + $0x84] sm:$0xff]  ;;  %871 = vst [vmem:[#allocation3 + $0x92] sm:$0xff] %v855_v19  ;;  %v902_v25 = vpack.c.bf16 %v886_v22, %v886_v22  ;;  %v935_v41 = vpack.c.bf16 %v855_v19, %v855_v19 }
 0x17a   : > { %v965_v3 = vpack.c.bf16 %v949_v23, %v949_v23  ;;  %v966_v26 = vpack.c.bf16 %v950_v24, %v950_v24 }
 0x17b   : > { %v998_v31 = vunpack.c.l.b16 %v902_v25  ;;  %v1047_v11 = vunpack.c.l.b16 %v935_v41 }
 0x17c   : > { %v1093_v32 = vunpack.c.l.b16 %v965_v3  ;;  %v1094_v33 = vunpack.c.l.b16 %v966_v26  ;;  %v819_v34 = vpop.f32.mrf.mxu2 }
 0x17d   : > { %v820_v36 = vadd.f32 %v819_v34, %v771_v29  ;;  %v1008_v38 = vpack.c.b16 %v998_v31, %v997_v37 }
 0x17e   : > { %v1104_v39 = vpack.c.b16 %v1094_v33, %v1093_v32 }
 0x17f   : > { %v856_v40 = vmax.f32 %v820_v36, 0.0  ;;  %1341 = vmatmul.bf16.gmra.mxu3 %v1008_v38  ;;  %v1929_v38 = vld [vmem:[%s2195_s14] sm:$0xff] }
 0x180   : > { %1439 = vmatmul.bf16.gmra.mxu1 %v1104_v39  ;;  %v887_v47 = vld [vmem:[#allocation3 + $0x90] sm:$0xff] }
 0x181   : > { %872 = vst [vmem:[#allocation3 + $0x9a] sm:$0xff] %v856_v40  ;;  %v936_v42 = vpack.c.bf16 %v856_v40, %v856_v40  ;;  %v903_v53 = vpack.c.bf16 %v887_v47, %v887_v47 }
 0x183   : > { %v1048_v44 = vunpack.c.l.b16 %v936_v42  ;;  %v999_v56 = vunpack.c.l.b16 %v903_v53 }
 0x184   : > { %v822_v48 = vpop.f32.mrf.mxu2 }
 0x185   : > { %v823_v49 = vadd.f32 %v822_v48, %v774_v43  ;;  %v1057_v50 = vpack.c.b16 %v1048_v44, %v1047_v11  ;;  %v1930_v44 = vld [vmem:[%s2195_s14 + $0x8] sm:$0xff] }
 0x187   : > { %v857_v52 = vmax.f32 %v823_v49, 0.0  ;;  %1395 = vmatmul.bf16.gmra.mxu0 %v1057_v50 }
 0x188   : > { %v888_v54 = vld [vmem:[#allocation3 + $0x98] sm:$0xff] }
 0x189   : > { %v951_v55 = vld [vmem:[#allocation3 + $0x94] sm:$0xff]  ;;  %v952_v58 = vld [vmem:[#allocation3 + $0x9c] sm:$0xff]  ;;  %873 = vst [vmem:[#allocation3 + $0xaa] sm:$0xff] %v857_v52  ;;  %v904_v59 = vpack.c.bf16 %v888_v54, %v888_v54  ;;  %v937_v7 = vpack.c.bf16 %v857_v52, %v857_v52 }
 0x18a   : > { %v967_v46 = vpack.c.bf16 %v951_v55, %v951_v55  ;;  %v968_v60 = vpack.c.bf16 %v952_v58, %v952_v58 }
 0x18b   : > { %v1000_v61 = vunpack.c.l.b16 %v904_v59  ;;  %v1049_v9 = vunpack.c.l.b16 %v937_v7 }
 0x18c   : > { %v1095_v63 = vunpack.c.l.b16 %v967_v46  ;;  %v1096_v0 = vunpack.c.l.b16 %v968_v60  ;;  %v824_v1 = vpop.f32.mrf.mxu2 }
 0x18d   : > { %v825_v2 = vadd.f32 %v824_v1, %v776_v20  ;;  %v1009_v4 = vpack.c.b16 %v1000_v61, %v999_v56 }
 0x18e   : > { %v1105_v5 = vpack.c.b16 %v1096_v0, %v1095_v63 }
 0x18f   : > { %v858_v6 = vmax.f32 %v825_v2, 0.0  ;;  %1346 = vmatmul.bf16.gmra.mxu3 %v1009_v4 }
 0x190   : > { %1444 = vmatmul.bf16.gmra.mxu1 %v1105_v5  ;;  %v889_v12 = vld [vmem:[#allocation3 + $0xa8] sm:$0xff] }
 0x191   : > { %874 = vst [vmem:[#allocation3 + $0xb2] sm:$0xff] %v858_v6  ;;  %v938_v8 = vpack.c.bf16 %v858_v6, %v858_v6  ;;  %v905_v30 = vpack.c.bf16 %v889_v12, %v889_v12 }
 0x193   : > { %v1050_v10 = vunpack.c.l.b16 %v938_v8  ;;  %v1001_v22 = vunpack.c.l.b16 %v905_v30 }
 0x195   : > { %v1058_v13 = vpack.c.b16 %v1050_v10, %v1049_v9 }
 0x197   : > { %1400 = vmatmul.bf16.gmra.mxu0 %v1058_v13 }
 0x198   : > { %v890_v62 = vld [vmem:[#allocation3 + $0xb0] sm:$0xff] }
 0x199   : > { %v953_v14 = vld [vmem:[#allocation3 + $0xac] sm:$0xff]  ;;  %v954_v17 = vld [vmem:[#allocation3 + $0xb4] sm:$0xff]  ;;  %v906_v18 = vpack.c.bf16 %v890_v62, %v890_v62 }
 0x19a   : > { %v969_v19 = vpack.c.bf16 %v953_v14, %v953_v14  ;;  %v970_v21 = vpack.c.bf16 %v954_v17, %v954_v17 }
 0x19b   : > { %v1002_v23 = vunpack.c.l.b16 %v906_v18 }
 0x19c   : > { %v1097_v24 = vunpack.c.l.b16 %v969_v19  ;;  %v1098_v25 = vunpack.c.l.b16 %v970_v21 }
 0x19d   : > { %v1010_v3 = vpack.c.b16 %v1002_v23, %v1001_v22  ;;  %v1931_v23 = vld [vmem:[%s2195_s14 + $0x40] sm:$0xff] }
 0x19e   : > { %v1106_v26 = vpack.c.b16 %v1098_v25, %v1097_v24 }
 0x19f   : > { %1351 = vmatmul.bf16.gmra.mxu3 %v1010_v3 }
 0x1a0   : > { %1449 = vmatmul.bf16.gmra.mxu1 %v1106_v26 }
 0x1a4   : > { %v1366_v29 = vpop.f32.mrf.mxu0 }
 0x1ac   : > { %v1368_v31 = vpop.f32.mrf.mxu0 }
 0x1ad   : > { %v1415_v37 = vpop.f32.mrf.mxu1 }
 0x1b2   : > { %v1317_v32 = vpop.f32.mrf.mxu3 }
 0x1b3   : > { %v1367_v33 = vadd.f32 %v1366_v29, %v1317_v32 }
 0x1b4   : > { %v1371_v35 = vpop.f32.mrf.mxu0 }
 0x1b5   : > { %v1417_v34 = vpop.f32.mrf.mxu1  ;;  %v1416_v36 = vadd.f32 %v1415_v37, %v1367_v33  ;;  %v1932_v37 = vld [vmem:[%s2195_s14 + $0x48] sm:$0xff] }
 0x1b7   : > { %v1455_v39 = vadd.f32 %v1929_v38, %v1416_v36  ;;  %v1933_v36 = vld [vmem:[%s2195_s14 + $0x50] sm:$0xff] }
 0x1b9   : > { %1471 = vst [vmem:[%s2318_s15] sm:$0xff] %v1455_v39 }
 0x1ba   : > { %v1319_v40 = vpop.f32.mrf.mxu3 }
 0x1bb   : > { %v1369_v41 = vadd.f32 %v1368_v31, %v1319_v40 }
 0x1bc   : > { %v1373_v43 = vpop.f32.mrf.mxu0 }
 0x1bd   : > { %v1420_v42 = vpop.f32.mrf.mxu1  ;;  %v1418_v11 = vadd.f32 %v1417_v34, %v1369_v41 }
 0x1bf   : > { %v1456_v48 = vadd.f32 %v1930_v44, %v1418_v11  ;;  %v1934_v11 = vld [vmem:[%s2195_s14 + $0x58] sm:$0xff] }
 0x1c1   : > { %1472 = vst [vmem:[%s2318_s15 + $0x8] sm:$0xff] %v1456_v48 }
 0x1c2   : > { %v1322_v47 = vpop.f32.mrf.mxu3 }
 0x1c3   : > { %v1372_v49 = vadd.f32 %v1371_v35, %v1322_v47 }
 0x1c4   : > { %v1376_v51 = vpop.f32.mrf.mxu0 }
 0x1c5   : > { %v1422_v50 = vpop.f32.mrf.mxu1  ;;  %v1421_v52 = vadd.f32 %v1420_v42, %v1372_v49 }
 0x1c7   : > { %v1457_v53 = vadd.f32 %v1421_v52, %v2264_v27 }
 0x1c9   : > { %1473 = vst [vmem:[%s2318_s15 + $0x10] sm:$0xff] %v1457_v53 }
 0x1ca   : > { %v1324_v54 = vpop.f32.mrf.mxu3 }
 0x1cb   : > { %v1374_v55 = vadd.f32 %v1373_v43, %v1324_v54 }
 0x1cc   : > { %v1378_v59 = vpop.f32.mrf.mxu0 }
 0x1cd   : > { %v1425_v58 = vpop.f32.mrf.mxu1  ;;  %v1423_v46 = vadd.f32 %v1422_v50, %v1374_v55 }
 0x1cf   : > { %v1458_v60 = vadd.f32 %v1423_v46, %v2267_v28 }
 0x1d1   : > { %1474 = vst [vmem:[%s2318_s15 + $0x18] sm:$0xff] %v1458_v60 }
 0x1d2   : > { %v1327_v20 = vpop.f32.mrf.mxu3 }
 0x1d3   : > { %v1377_v56 = vadd.f32 %v1376_v51, %v1327_v20  ;;  %v1935_v51 = vld [vmem:[%s2195_s14 + $0x60] sm:$0xff] }
 0x1d4   : > { %v1381_v63 = vpop.f32.mrf.mxu0 }
 0x1d5   : > { %v1427_v61 = vpop.f32.mrf.mxu1  ;;  %v1426_v0 = vadd.f32 %v1425_v58, %v1377_v56 }
 0x1d7   : > { %v1459_v1 = vadd.f32 %v1426_v0, %v2276_v57  ;;  %v1937_v0 = vld [vmem:[%s2195_s14 + $0x70] sm:$0xff] }
 0x1d9   : > { %1475 = vst [vmem:[%s2318_s15 + $0x20] sm:$0xff] %v1459_v1 }
 0x1da   : > { %v1329_v27 = vpop.f32.mrf.mxu3 }
 0x1db   : > { %v1379_v2 = vadd.f32 %v1378_v59, %v1329_v27  ;;  %v1936_v59 = vld [vmem:[%s2195_s14 + $0x68] sm:$0xff] }
 0x1dc   : > { %v1383_v5 = vpop.f32.mrf.mxu0 }
 0x1dd   : > { %v1430_v4 = vpop.f32.mrf.mxu1  ;;  %v1428_v6 = vadd.f32 %v1427_v61, %v1379_v2 }
 0x1df   : > { %v1460_v7 = vadd.f32 %v1428_v6, %v2279_v45 }
 0x1e1   : > { %1476 = vst [vmem:[%s2318_s15 + $0x28] sm:$0xff] %v1460_v7  ;;  %v1938_v7 = vld [vmem:[%s2195_s14 + $0x78] sm:$0xff] }
 0x1e2   : > { %v1332_v28 = vpop.f32.mrf.mxu3 }
 0x1e3   : > { %v1382_v8 = vadd.f32 %v1381_v63, %v1332_v28 }
 0x1e4   : > { %v1386_v10 = vpop.f32.mrf.mxu0 }
 0x1e5   : > { %v1432_v9 = vpop.f32.mrf.mxu1  ;;  %v1431_v12 = vadd.f32 %v1430_v4, %v1382_v8 }
 0x1e7   : > { %v1461_v13 = vadd.f32 %v1431_v12, %v2284_v15 }
 0x1e9   : > { %1477 = vst [vmem:[%s2318_s15 + $0x30] sm:$0xff] %v1461_v13 }
 0x1ea   : > { %v1334_v57 = vpop.f32.mrf.mxu3 }
 0x1eb   : > { %v1384_v30 = vadd.f32 %v1383_v5, %v1334_v57 }
 0x1ec   : > { %v1388_v17 = vpop.f32.mrf.mxu0 }
 0x1ed   : > { %v1435_v62 = vpop.f32.mrf.mxu1  ;;  %v1433_v14 = vadd.f32 %v1432_v9, %v1384_v30 }
 0x1ef   : > { %v1462_v18 = vadd.f32 %v1433_v14, %v2287_v16 }
 0x1f1   : > { %1478 = vst [vmem:[%s2318_s15 + $0x38] sm:$0xff] %v1462_v18 }
 0x1f2   : > { %v1337_v45 = vpop.f32.mrf.mxu3 }
 0x1f3   : > { %v1387_v19 = vadd.f32 %v1386_v10, %v1337_v45 }
 0x1f4   : > { %v1391_v15 = vpop.f32.mrf.mxu0 }
 0x1f5   : > { %v1437_v21 = vpop.f32.mrf.mxu1  ;;  %v1436_v22 = vadd.f32 %v1435_v62, %v1387_v19 }
 0x1f7   : > { %v1463_v24 = vadd.f32 %v1931_v23, %v1436_v22 }
 0x1f9   : > { %1479 = vst [vmem:[%s2318_s15 + $0x40] sm:$0xff] %v1463_v24 }
 0x1fa   : > { %v1339_v25 = vpop.f32.mrf.mxu3 }
 0x1fb   : > { %v1389_v3 = vadd.f32 %v1388_v17, %v1339_v25 }
 0x1fc   : > { %v1393_v32 = vpop.f32.mrf.mxu0 }
 0x1fd   : > { %v1440_v26 = vpop.f32.mrf.mxu1  ;;  %v1438_v29 = vadd.f32 %v1437_v21, %v1389_v3 }
 0x1ff   : > { %v1464_v31 = vadd.f32 %v1932_v37, %v1438_v29 }
 0x201   : > { %1480 = vst [vmem:[%s2318_s15 + $0x48] sm:$0xff] %v1464_v31 }
 0x202   : > { %v1342_v16 = vpop.f32.mrf.mxu3 }
 0x203   : > { %v1392_v33 = vadd.f32 %v1391_v15, %v1342_v16 }
 0x204   : > { %v1396_v41 = vpop.f32.mrf.mxu0 }
 0x205   : > { %v1442_v34 = vpop.f32.mrf.mxu1  ;;  %v1441_v35 = vadd.f32 %v1440_v26, %v1392_v33 }
 0x207   : > { %v1465_v38 = vadd.f32 %v1933_v36, %v1441_v35 }
 0x209   : > { %1481 = vst [vmem:[%s2318_s15 + $0x50] sm:$0xff] %v1465_v38 }
 0x20a   : > { %v1344_v39 = vpop.f32.mrf.mxu3 }
 0x20b   : > { %v1394_v40 = vadd.f32 %v1393_v32, %v1344_v39 }
 0x20c   : > { %v1398_v50 = vpop.f32.mrf.mxu0 }
 0x20d   : > { %v1443_v42 = vadd.f32 %v1442_v34, %v1394_v40  ;;  %v1445_v43 = vpop.f32.mrf.mxu1 }
 0x20f   : > { %v1466_v44 = vadd.f32 %v1934_v11, %v1443_v42 }
 0x211   : > { %1482 = vst [vmem:[%s2318_s15 + $0x58] sm:$0xff] %v1466_v44 }
 0x212   : > { %v1347_v48 = vpop.f32.mrf.mxu3 }
 0x213   : > { %v1397_v47 = vadd.f32 %v1396_v41, %v1347_v48 }
 0x214   : > { %v1401_v60 = vpop.f32.mrf.mxu0 }
 0x215   : > { %v1446_v49 = vadd.f32 %v1445_v43, %v1397_v47  ;;  %v1447_v53 = vpop.f32.mrf.mxu1 }
 0x217   : > { %v1467_v52 = vadd.f32 %v1935_v51, %v1446_v49 }
 0x219   : > { %1483 = vst [vmem:[%s2318_s15 + $0x60] sm:$0xff] %v1467_v52 }
 0x21a   : > { %v1349_v54 = vpop.f32.mrf.mxu3 }
 0x21b   : > { %v1399_v55 = vadd.f32 %v1398_v50, %v1349_v54 }
 0x21c   : > { %v1403_v27 = vpop.f32.mrf.mxu0 }
 0x21d   : > { %v1448_v58 = vadd.f32 %v1447_v53, %v1399_v55  ;;  %v1450_v20 = vpop.f32.mrf.mxu1 }
 0x21f   : > { %v1468_v46 = vadd.f32 %v1936_v59, %v1448_v58 }
 0x221   : > { %1484 = vst [vmem:[%s2318_s15 + $0x68] sm:$0xff] %v1468_v46 }
 0x222   : > { %v1352_v56 = vpop.f32.mrf.mxu3 }
 0x223   : > { %v1402_v61 = vadd.f32 %v1401_v60, %v1352_v56 }
 0x225   : > { %v1451_v63 = vadd.f32 %v1450_v20, %v1402_v61  ;;  %v1452_v5 = vpop.f32.mrf.mxu1 }
 0x227   : > { %v1469_v1 = vadd.f32 %v1937_v0, %v1451_v63 }
 0x229   : > { %1485 = vst [vmem:[%s2318_s15 + $0x70] sm:$0xff] %v1469_v1 }
 0x22a   : > { %v1354_v2 = vpop.f32.mrf.mxu3 }
 0x22b   : > { %v1404_v4 = vadd.f32 %v1403_v27, %v1354_v2 }
 0x22d   : > { %v1453_v6 = vadd.f32 %v1452_v5, %v1404_v4 }
 0x22f   : > { %v1470_v28 = vadd.f32 %v1938_v7, %v1453_v6 }
 0x231   : > { %1486 = vst [vmem:[%s2318_s15 + $0x78] sm:$0xff] %v1470_v28 }
 0x232   : > { %2026 = shalt.err (!%p2023_p10)
}
 0x233   : > { %s2077_s4 = smov 128   ;;  %s2078_s5 = smov 8  }
 0x234   : > { %1871 = dma.vmem_to_hbm [thread:$0]  (%p2161_p7), %s1502_s19, 2048, %s1504_s21, %s1488_s13, %s2077_s4, %s2077_s4, %s2078_s5  }
 0x235 PF: > { %s1518_s6 = sand.u32 1, %s2057_s9   ;;  %p2393_p12 = scmp.ge.s32.totalorder %s2069_s12, 2 }
 0x236   : > { %s1519_s7 = scalar_lea.sflag [#allocation6], %s1518_s6 }
 0x237   : > { %p1882_p13 = pnand %p2393_p12, %p2129_p6 }
 0x239   : > { %p1883_p0 = pneg %p1882_p13 }
 0x23b   : > { %2052 = dma.done.wait (%p1883_p0), %s1519_s7, 2048  }
 0x23c   : > { %2054 = vsyncadd (%p1883_p0), %s1519_s7, 4294965248  ;;  %p16_p3 = scmp.ge.s32.totalorder %s2147_s23, 4   ;;  %s2394_s9 = smov %s2061_s10 }
 0x23d   : > { %s2395_s10 = smov %s2065_s11  ;;  %s2396_s11 = smov %s2157_s28 }
 0x23e   : > { %s2397_s12 = smov %s2147_s23  ;;  %18 = sbr.rel (!%p16_p3) target bundleno = 6 (0x6), region = 78 }
 0x243   :  { %1525 = vsyncpa [#allocation5], 1 }
 0x244   :  { %1527 = vsyncpa [#allocation5 + $0x1], 1 }
 0x245   :  { %1528 = vsyncpa [#allocation8], 1 }
 0x246   :  { %1529 = vsyncpa [#allocation6], 1 }
 0x247   :  { %1531 = vsyncpa [#allocation6 + $0x1], 1 }

</bundles_post_ra>
